<compile_context>
chip_gen: v5e
topology: v5e:2x2
jax: 0.10.0
libtpu: 0.0.40
codegen_flags: <defaults>
</compile_context>

<pallas_src>
import numpy as np
import jax
import jax.numpy as jnp
from jax.experimental import pallas as pl
from jax.experimental.pallas import tpu as pltpu

LATENT_SPACE_DIM = 8
_TWO_L = 2 * LATENT_SPACE_DIM        # 16: mean + log_var heads fused
_P3 = 4 * 4                          # spatial positions after conv3 (4x4)


# ----------------------------------------------------------------- kernel ----

def _vae_encoder_kernel(p1_ref, w1_ref, b1_ref,
                        g2_ref, w2_ref, b2_ref,
                        g3_ref, w3_ref, b3_ref,
                        whc_ref, mask_ref, r_ref, bh_ref,
                        z_ref):
    f32 = jnp.float32

    # ---- conv1 (+ReLU): im2col patches of the 1-channel input come from the wrapper.
    p1 = p1_ref[0]                                                       # (256, 9)
    y1 = jnp.maximum(
        jnp.dot(p1, w1_ref[...], preferred_element_type=f32) + b1_ref[...], 0.0)  # (256, 32)

    # ---- conv2 (+ReLU): taps via gather-as-matmul, then 9 independent tap matmuls.
    t2 = jnp.dot(g2_ref[...], y1, preferred_element_type=f32)            # (9*64, 32)
    d2 = [jnp.dot(t2[t * 64:(t + 1) * 64, :], w2_ref[t], preferred_element_type=f32)
          for t in range(9)]
    y2 = jnp.maximum(b2_ref[...] + sum(d2), 0.0)                         # (64, 64)

    # ---- conv3 (+ReLU)
    t3 = jnp.dot(g3_ref[...], y2, preferred_element_type=f32)            # (9*16, 64)
    d3 = [jnp.dot(t3[t * 16:(t + 1) * 16, :], w3_ref[t], preferred_element_type=f32)
          for t in range(9)]
    y3 = jnp.maximum(b3_ref[...] + sum(d3), 0.0)                         # (16, 128) = (pos, chan)

    # ---- fused linear heads (mean & log_var); torch flatten order folded into weights.
    a = jnp.dot(y3, whc_ref[...], preferred_element_type=f32)            # (16, 256)
    s = jnp.sum(a * mask_ref[...], axis=0, keepdims=True)                # (1, 256)
    z = jnp.dot(s, r_ref[...], preferred_element_type=f32) + bh_ref[...]  # (1, 2L)
    z_ref[0] = z.astype(z_ref.dtype)                                     # single store


# ------------------------------------------------------------- constants ----

def _gather_matrix(n):
    """0/1 matrix implementing the stride-2, pad-1, 3x3 tap gather on an n x n grid.

    Row t*m*m + i*m + j picks input pixel (2i+kh-1, 2j+kw-1) (t = kh*3+kw); out-of-range
    taps are all-zero rows, reproducing the zero padding.
    """
    m = n // 2
    g = np.zeros((9 * m * m, n * n), dtype=np.float32)
    for kh in range(3):
        for kw in range(3):
            t = kh * 3 + kw
            for i in range(m):
                for j in range(m):
                    h, w = 2 * i + kh - 1, 2 * j + kw - 1
                    if 0 <= h < n and 0 <= w < n:
                        g[t * m * m + i * m + j, h * n + w] = 1.0
    return g


# --------------------------------------------------------------- wrapper ----

def variational_encoder_forward(x, p):
    """x: (B, 1, 32, 32) NCHW.  Returns (z_mean, z_log_var), each (B, LATENT_SPACE_DIM)."""
    B = x.shape[0]
    f32 = jnp.float32
    L = LATENT_SPACE_DIM

    # conv1 im2col on the tiny single-channel raw input (wrapper layout glue only;
    # conv2/conv3 taps are generated inside the kernel and never hit HBM).
    xp = jnp.pad(x[:, 0], ((0, 0), (1, 1), (1, 1)))
    taps = [xp[:, kh:kh + 32:2, kw:kw + 32:2] for kh in range(3) for kw in range(3)]
    patches1 = jnp.stack(taps, axis=-1).reshape(B, 16 * 16, 9).astype(f32)

    # weight prep (tiny, trace-time under jit)
    w1f = p["w1"].reshape(32, 9).T                                   # (9, 32), k = (kh, kw)
    w2t = jnp.transpose(p["w2"], (2, 3, 1, 0)).reshape(9, 32, 64)    # [t, cin, cout]
    w3t = jnp.transpose(p["w3"], (2, 3, 1, 0)).reshape(9, 64, 128)
    b1 = p["b1"].reshape(1, 32)
    b2 = p["b2"].reshape(1, 64)
    b3 = p["b3"].reshape(1, 128)

    # fused heads: torch flatten index = c*16 + pos  ->  whc[c, pos*2L + l]
    wcat = jnp.concatenate([p["wm"], p["wv"]], axis=0)               # (2L, 2048)
    whc = wcat.reshape(_TWO_L, 128, _P3).transpose(1, 2, 0).reshape(128, _P3 * _TWO_L)
    bh = jnp.concatenate([p["bm"], p["bv"]]).reshape(1, _TWO_L)

    # constant gather / selection matrices (trace-time numpy constants)
    g2 = jnp.asarray(_gather_matrix(16))                             # (576, 256)
    g3 = jnp.asarray(_gather_matrix(8))                              # (144, 64)
    mask = jnp.asarray(np.kron(np.eye(_P3, dtype=np.float32),
                               np.ones((1, _TWO_L), np.float32)))    # (16, 256)
    rsel = jnp.asarray(np.tile(np.eye(_TWO_L, dtype=np.float32), (_P3, 1)))  # (256, 16)

    z = pl.pallas_call(
        _vae_encoder_kernel,
        out_shape=jax.ShapeDtypeStruct((B, 1, _TWO_L), f32),
        grid=(B,),
        in_specs=[
            pl.BlockSpec((1, 256, 9), lambda b: (b, 0, 0)),          # conv1 patches (per b)
            pl.BlockSpec((9, 32), lambda b: (0, 0)),                 # w1
            pl.BlockSpec((1, 32), lambda b: (0, 0)),                 # b1
            pl.BlockSpec((576, 256), lambda b: (0, 0)),              # G2
            pl.BlockSpec((9, 32, 64), lambda b: (0, 0, 0)),          # w2 taps
            pl.BlockSpec((1, 64), lambda b: (0, 0)),                 # b2
            pl.BlockSpec((144, 64), lambda b: (0, 0)),               # G3
            pl.BlockSpec((9, 64, 128), lambda b: (0, 0, 0)),         # w3 taps
            pl.BlockSpec((1, 128), lambda b: (0, 0)),                # b3
            pl.BlockSpec((128, _P3 * _TWO_L), lambda b: (0, 0)),     # fused head weights
            pl.BlockSpec((_P3, _P3 * _TWO_L), lambda b: (0, 0)),     # diag mask
            pl.BlockSpec((_P3 * _TWO_L, _TWO_L), lambda b: (0, 0)),  # lane-fold selector
            pl.BlockSpec((1, _TWO_L), lambda b: (0, 0)),             # fused head bias
        ],
        out_specs=pl.BlockSpec((1, 1, _TWO_L), lambda b: (b, 0, 0)),
        compiler_params=pltpu.CompilerParams(
            dimension_semantics=("parallel",),            # batch split across v7x's 2 TCs
            vmem_limit_bytes=32 * 1024 * 1024),           # explicit budget; use is ~3 MiB
    )(patches1, w1f, b1, g2, w2t, b2, g3, w3t, b3, whc, mask, rsel, bh)

    z = z.reshape(B, _TWO_L)
    return z[:, :L], z[:, L:]


# ----------------------------------------------------------- params / ref ----

def init_params(key):
    ks = jax.random.split(key, 10)
    scale = 0.05
    en_out_dim = 128 * 4 * 4
    return {
        "w1": scale * jax.random.normal(ks[0], (32, 1, 3, 3), jnp.float32),
        "b1": scale * jax.random.normal(ks[1], (32,), jnp.float32),
        "w2": scale * jax.random.normal(ks[2], (64, 32, 3, 3), jnp.float32),
        "b2": scale * jax.random.normal(ks[3], (64,), jnp.float32),
        "w3": scale * jax.random.normal(ks[4], (128, 64, 3, 3), jnp.float32),
        "b3": scale * jax.random.normal(ks[5], (128,), jnp.float32),
        "wm": scale * jax.random.normal(ks[6], (LATENT_SPACE_DIM, en_out_dim), jnp.float32),
        "bm": scale * jax.random.normal(ks[7], (LATENT_SPACE_DIM,), jnp.float32),
        "wv": scale * jax.random.normal(ks[8], (LATENT_SPACE_DIM, en_out_dim), jnp.float32),
        "bv": scale * jax.random.normal(ks[9], (LATENT_SPACE_DIM,), jnp.float32),
    }


def reference_forward(x, p):
    def conv(x, w, b):
        y = jax.lax.conv_general_dilated(
            x, w, window_strides=(2, 2), padding=((1, 1), (1, 1)),
            dimension_numbers=("NCHW", "OIHW", "NCHW"))
        return jax.nn.relu(y + b.reshape(1, -1, 1, 1))
    x = conv(x, p["w1"], p["b1"])
    x = conv(x, p["w2"], p["b2"])
    x = conv(x, p["w3"], p["b3"])
    xf = x.reshape(x.shape[0], -1)
    return xf @ p["wm"].T + p["bm"], xf @ p["wv"].T + p["bv"]


# -------------------------------------------------------------------- main ---

if __name__ == "__main__":
    key = jax.random.PRNGKey(0)
    kx, kp = jax.random.split(key)
    # EN_OUT_SHAPE = (128, 4, 4) after three stride-2 convs => 32x32 input.
    x = jax.random.normal(kx, (2, 1, 32, 32), jnp.float32)
    params = init_params(kp)

    z_mean, z_log_var = jax.jit(variational_encoder_forward)(x, params)
    jax.block_until_ready((z_mean, z_log_var))

    ref_mean, ref_log_var = reference_forward(x, params)
    assert z_mean.shape == (2, LATENT_SPACE_DIM)
    assert z_log_var.shape == (2, LATENT_SPACE_DIM)
    assert jnp.allclose(z_mean, ref_mean, atol=1e-4, rtol=1e-4)
    assert jnp.allclose(z_log_var, ref_log_var, atol=1e-4, rtol=1e-4)
    print("KERNEL_OK")
</pallas_src>

<mosaic_0001>
module attributes {stable_mosaic.version = 11 : i64} {
  func.func @_vae_encoder_kernel(%arg0: i32, %arg1: memref<1x256x9xf32, #tpu.memory_space<vmem>>, %arg2: memref<9x32xf32, #tpu.memory_space<vmem>>, %arg3: memref<1x32xf32, #tpu.memory_space<vmem>>, %arg4: memref<576x256xf32, #tpu.memory_space<vmem>>, %arg5: memref<9x32x64xf32, #tpu.memory_space<vmem>>, %arg6: memref<1x64xf32, #tpu.memory_space<vmem>>, %arg7: memref<144x64xf32, #tpu.memory_space<vmem>>, %arg8: memref<9x64x128xf32, #tpu.memory_space<vmem>>, %arg9: memref<1x128xf32, #tpu.memory_space<vmem>>, %arg10: memref<128x256xf32, #tpu.memory_space<vmem>>, %arg11: memref<16x256xf32, #tpu.memory_space<vmem>>, %arg12: memref<256x16xf32, #tpu.memory_space<vmem>>, %arg13: memref<1x16xf32, #tpu.memory_space<vmem>>, %arg14: memref<1x1x16xf32, #tpu.memory_space<vmem>>) attributes {dimension_semantics = [#tpu.dimension_semantics<parallel>], iteration_bounds = array<i64: 2>, scalar_prefetch = 0 : i64, scratch_operands = 0 : i64, tpu.core_type = #tpu.core_type<tc>, window_params = [{transform_indices = @transform_0, window_bounds = array<i64: 1, 256, 9>}, {pipeline_mode = #tpu.pipeline_mode<synchronous>, transform_indices = @transform_1, window_bounds = array<i64: 9, 32>}, {pipeline_mode = #tpu.pipeline_mode<synchronous>, transform_indices = @transform_2, window_bounds = array<i64: 1, 32>}, {pipeline_mode = #tpu.pipeline_mode<synchronous>, transform_indices = @transform_3, window_bounds = array<i64: 576, 256>}, {pipeline_mode = #tpu.pipeline_mode<synchronous>, transform_indices = @transform_4, window_bounds = array<i64: 9, 32, 64>}, {pipeline_mode = #tpu.pipeline_mode<synchronous>, transform_indices = @transform_5, window_bounds = array<i64: 1, 64>}, {pipeline_mode = #tpu.pipeline_mode<synchronous>, transform_indices = @transform_6, window_bounds = array<i64: 144, 64>}, {pipeline_mode = #tpu.pipeline_mode<synchronous>, transform_indices = @transform_7, window_bounds = array<i64: 9, 64, 128>}, {pipeline_mode = #tpu.pipeline_mode<synchronous>, transform_indices = @transform_8, window_bounds = array<i64: 1, 128>}, {pipeline_mode = #tpu.pipeline_mode<synchronous>, transform_indices = @transform_9, window_bounds = array<i64: 128, 256>}, {pipeline_mode = #tpu.pipeline_mode<synchronous>, transform_indices = @transform_10, window_bounds = array<i64: 16, 256>}, {pipeline_mode = #tpu.pipeline_mode<synchronous>, transform_indices = @transform_11, window_bounds = array<i64: 256, 16>}, {pipeline_mode = #tpu.pipeline_mode<synchronous>, transform_indices = @transform_12, window_bounds = array<i64: 1, 16>}, {transform_indices = @transform_13, window_bounds = array<i64: 1, 1, 16>}]} {
    %c0 = arith.constant 0 : index
    %c0_0 = arith.constant 0 : index
    %c0_1 = arith.constant 0 : index
    %0 = vector.load %arg1[%c0, %c0_0, %c0_1] : memref<1x256x9xf32, #tpu.memory_space<vmem>>, vector<1x256x9xf32>
    %1 = vector.shape_cast %0 : vector<1x256x9xf32> to vector<256x9xf32>
    %c0_2 = arith.constant 0 : index
    %c0_3 = arith.constant 0 : index
    %2 = vector.load %arg2[%c0_2, %c0_3] : memref<9x32xf32, #tpu.memory_space<vmem>>, vector<9x32xf32>
    %cst = arith.constant dense<0.000000e+00> : vector<256x32xf32>
    %3 = tpu.matmul %1, %2, %cst {dimension_numbers = #tpu.dot_dimension_numbers<[1], [0], [0], [1], [0, 0, 1, 1], [], []>} : vector<256x9xf32>, vector<9x32xf32>, vector<256x32xf32> -> vector<256x32xf32>
    %c0_4 = arith.constant 0 : index
    %c0_5 = arith.constant 0 : index
    %4 = vector.load %arg3[%c0_4, %c0_5] : memref<1x32xf32, #tpu.memory_space<vmem>>, vector<1x32xf32>
    %5 = vector.broadcast %4 : vector<1x32xf32> to vector<256x32xf32>
    %6 = arith.addf %3, %5 : vector<256x32xf32>
    %cst_6 = arith.constant 0.000000e+00 : f32
    %7 = vector.broadcast %cst_6 : f32 to vector<256x32xf32>
    %8 = arith.maximumf %6, %7 : vector<256x32xf32>
    %c0_7 = arith.constant 0 : index
    %c0_8 = arith.constant 0 : index
    %9 = vector.load %arg4[%c0_7, %c0_8] : memref<576x256xf32, #tpu.memory_space<vmem>>, vector<576x256xf32>
    %cst_9 = arith.constant dense<0.000000e+00> : vector<576x32xf32>
    %10 = tpu.matmul %9, %8, %cst_9 {dimension_numbers = #tpu.dot_dimension_numbers<[1], [0], [0], [1], [0, 0, 1, 1], [], []>} : vector<576x256xf32>, vector<256x32xf32>, vector<576x32xf32> -> vector<576x32xf32>
    %11 = vector.extract_strided_slice %10 {offsets = [0, 0], sizes = [64, 32], strides = [1, 1]} : vector<576x32xf32> to vector<64x32xf32>
    %c0_10 = arith.constant 0 : index
    %c0_11 = arith.constant 0 : index
    %c0_12 = arith.constant 0 : index
    %12 = vector.load %arg5[%c0_10, %c0_11, %c0_12] : memref<9x32x64xf32, #tpu.memory_space<vmem>>, vector<1x32x64xf32>
    %13 = vector.shape_cast %12 : vector<1x32x64xf32> to vector<32x64xf32>
    %cst_13 = arith.constant dense<0.000000e+00> : vector<64x64xf32>
    %14 = tpu.matmul %11, %13, %cst_13 {dimension_numbers = #tpu.dot_dimension_numbers<[1], [0], [0], [1], [0, 0, 1, 1], [], []>} : vector<64x32xf32>, vector<32x64xf32>, vector<64x64xf32> -> vector<64x64xf32>
    %15 = vector.extract_strided_slice %10 {offsets = [64, 0], sizes = [64, 32], strides = [1, 1]} : vector<576x32xf32> to vector<64x32xf32>
    %c1 = arith.constant 1 : index
    %c0_14 = arith.constant 0 : index
    %c0_15 = arith.constant 0 : index
    %16 = vector.load %arg5[%c1, %c0_14, %c0_15] : memref<9x32x64xf32, #tpu.memory_space<vmem>>, vector<1x32x64xf32>
    %17 = vector.shape_cast %16 : vector<1x32x64xf32> to vector<32x64xf32>
    %cst_16 = arith.constant dense<0.000000e+00> : vector<64x64xf32>
    %18 = tpu.matmul %15, %17, %cst_16 {dimension_numbers = #tpu.dot_dimension_numbers<[1], [0], [0], [1], [0, 0, 1, 1], [], []>} : vector<64x32xf32>, vector<32x64xf32>, vector<64x64xf32> -> vector<64x64xf32>
    %19 = vector.extract_strided_slice %10 {offsets = [128, 0], sizes = [64, 32], strides = [1, 1]} : vector<576x32xf32> to vector<64x32xf32>
    %c2 = arith.constant 2 : index
    %c0_17 = arith.constant 0 : index
    %c0_18 = arith.constant 0 : index
    %20 = vector.load %arg5[%c2, %c0_17, %c0_18] : memref<9x32x64xf32, #tpu.memory_space<vmem>>, vector<1x32x64xf32>
    %21 = vector.shape_cast %20 : vector<1x32x64xf32> to vector<32x64xf32>
    %cst_19 = arith.constant dense<0.000000e+00> : vector<64x64xf32>
    %22 = tpu.matmul %19, %21, %cst_19 {dimension_numbers = #tpu.dot_dimension_numbers<[1], [0], [0], [1], [0, 0, 1, 1], [], []>} : vector<64x32xf32>, vector<32x64xf32>, vector<64x64xf32> -> vector<64x64xf32>
    %23 = vector.extract_strided_slice %10 {offsets = [192, 0], sizes = [64, 32], strides = [1, 1]} : vector<576x32xf32> to vector<64x32xf32>
    %c3 = arith.constant 3 : index
    %c0_20 = arith.constant 0 : index
    %c0_21 = arith.constant 0 : index
    %24 = vector.load %arg5[%c3, %c0_20, %c0_21] : memref<9x32x64xf32, #tpu.memory_space<vmem>>, vector<1x32x64xf32>
    %25 = vector.shape_cast %24 : vector<1x32x64xf32> to vector<32x64xf32>
    %cst_22 = arith.constant dense<0.000000e+00> : vector<64x64xf32>
    %26 = tpu.matmul %23, %25, %cst_22 {dimension_numbers = #tpu.dot_dimension_numbers<[1], [0], [0], [1], [0, 0, 1, 1], [], []>} : vector<64x32xf32>, vector<32x64xf32>, vector<64x64xf32> -> vector<64x64xf32>
    %27 = vector.extract_strided_slice %10 {offsets = [256, 0], sizes = [64, 32], strides = [1, 1]} : vector<576x32xf32> to vector<64x32xf32>
    %c4 = arith.constant 4 : index
    %c0_23 = arith.constant 0 : index
    %c0_24 = arith.constant 0 : index
    %28 = vector.load %arg5[%c4, %c0_23, %c0_24] : memref<9x32x64xf32, #tpu.memory_space<vmem>>, vector<1x32x64xf32>
    %29 = vector.shape_cast %28 : vector<1x32x64xf32> to vector<32x64xf32>
    %cst_25 = arith.constant dense<0.000000e+00> : vector<64x64xf32>
    %30 = tpu.matmul %27, %29, %cst_25 {dimension_numbers = #tpu.dot_dimension_numbers<[1], [0], [0], [1], [0, 0, 1, 1], [], []>} : vector<64x32xf32>, vector<32x64xf32>, vector<64x64xf32> -> vector<64x64xf32>
    %31 = vector.extract_strided_slice %10 {offsets = [320, 0], sizes = [64, 32], strides = [1, 1]} : vector<576x32xf32> to vector<64x32xf32>
    %c5 = arith.constant 5 : index
    %c0_26 = arith.constant 0 : index
    %c0_27 = arith.constant 0 : index
    %32 = vector.load %arg5[%c5, %c0_26, %c0_27] : memref<9x32x64xf32, #tpu.memory_space<vmem>>, vector<1x32x64xf32>
    %33 = vector.shape_cast %32 : vector<1x32x64xf32> to vector<32x64xf32>
    %cst_28 = arith.constant dense<0.000000e+00> : vector<64x64xf32>
    %34 = tpu.matmul %31, %33, %cst_28 {dimension_numbers = #tpu.dot_dimension_numbers<[1], [0], [0], [1], [0, 0, 1, 1], [], []>} : vector<64x32xf32>, vector<32x64xf32>, vector<64x64xf32> -> vector<64x64xf32>
    %35 = vector.extract_strided_slice %10 {offsets = [384, 0], sizes = [64, 32], strides = [1, 1]} : vector<576x32xf32> to vector<64x32xf32>
    %c6 = arith.constant 6 : index
    %c0_29 = arith.constant 0 : index
    %c0_30 = arith.constant 0 : index
    %36 = vector.load %arg5[%c6, %c0_29, %c0_30] : memref<9x32x64xf32, #tpu.memory_space<vmem>>, vector<1x32x64xf32>
    %37 = vector.shape_cast %36 : vector<1x32x64xf32> to vector<32x64xf32>
    %cst_31 = arith.constant dense<0.000000e+00> : vector<64x64xf32>
    %38 = tpu.matmul %35, %37, %cst_31 {dimension_numbers = #tpu.dot_dimension_numbers<[1], [0], [0], [1], [0, 0, 1, 1], [], []>} : vector<64x32xf32>, vector<32x64xf32>, vector<64x64xf32> -> vector<64x64xf32>
    %39 = vector.extract_strided_slice %10 {offsets = [448, 0], sizes = [64, 32], strides = [1, 1]} : vector<576x32xf32> to vector<64x32xf32>
    %c7 = arith.constant 7 : index
    %c0_32 = arith.constant 0 : index
    %c0_33 = arith.constant 0 : index
    %40 = vector.load %arg5[%c7, %c0_32, %c0_33] : memref<9x32x64xf32, #tpu.memory_space<vmem>>, vector<1x32x64xf32>
    %41 = vector.shape_cast %40 : vector<1x32x64xf32> to vector<32x64xf32>
    %cst_34 = arith.constant dense<0.000000e+00> : vector<64x64xf32>
    %42 = tpu.matmul %39, %41, %cst_34 {dimension_numbers = #tpu.dot_dimension_numbers<[1], [0], [0], [1], [0, 0, 1, 1], [], []>} : vector<64x32xf32>, vector<32x64xf32>, vector<64x64xf32> -> vector<64x64xf32>
    %43 = vector.extract_strided_slice %10 {offsets = [512, 0], sizes = [64, 32], strides = [1, 1]} : vector<576x32xf32> to vector<64x32xf32>
    %c8 = arith.constant 8 : index
    %c0_35 = arith.constant 0 : index
    %c0_36 = arith.constant 0 : index
    %44 = vector.load %arg5[%c8, %c0_35, %c0_36] : memref<9x32x64xf32, #tpu.memory_space<vmem>>, vector<1x32x64xf32>
    %45 = vector.shape_cast %44 : vector<1x32x64xf32> to vector<32x64xf32>
    %cst_37 = arith.constant dense<0.000000e+00> : vector<64x64xf32>
    %46 = tpu.matmul %43, %45, %cst_37 {dimension_numbers = #tpu.dot_dimension_numbers<[1], [0], [0], [1], [0, 0, 1, 1], [], []>} : vector<64x32xf32>, vector<32x64xf32>, vector<64x64xf32> -> vector<64x64xf32>
    %c0_38 = arith.constant 0 : index
    %c0_39 = arith.constant 0 : index
    %47 = vector.load %arg6[%c0_38, %c0_39] : memref<1x64xf32, #tpu.memory_space<vmem>>, vector<1x64xf32>
    %cst_40 = arith.constant 0.000000e+00 : f32
    %48 = vector.broadcast %cst_40 : f32 to vector<64x64xf32>
    %49 = arith.addf %48, %14 : vector<64x64xf32>
    %50 = arith.addf %49, %18 : vector<64x64xf32>
    %51 = arith.addf %50, %22 : vector<64x64xf32>
    %52 = arith.addf %51, %26 : vector<64x64xf32>
    %53 = arith.addf %52, %30 : vector<64x64xf32>
    %54 = arith.addf %53, %34 : vector<64x64xf32>
    %55 = arith.addf %54, %38 : vector<64x64xf32>
    %56 = arith.addf %55, %42 : vector<64x64xf32>
    %57 = arith.addf %56, %46 : vector<64x64xf32>
    %58 = vector.broadcast %47 : vector<1x64xf32> to vector<64x64xf32>
    %59 = arith.addf %58, %57 : vector<64x64xf32>
    %cst_41 = arith.constant 0.000000e+00 : f32
    %60 = vector.broadcast %cst_41 : f32 to vector<64x64xf32>
    %61 = arith.maximumf %59, %60 : vector<64x64xf32>
    %c0_42 = arith.constant 0 : index
    %c0_43 = arith.constant 0 : index
    %62 = vector.load %arg7[%c0_42, %c0_43] : memref<144x64xf32, #tpu.memory_space<vmem>>, vector<144x64xf32>
    %cst_44 = arith.constant dense<0.000000e+00> : vector<144x64xf32>
    %63 = tpu.matmul %62, %61, %cst_44 {dimension_numbers = #tpu.dot_dimension_numbers<[1], [0], [0], [1], [0, 0, 1, 1], [], []>} : vector<144x64xf32>, vector<64x64xf32>, vector<144x64xf32> -> vector<144x64xf32>
    %64 = vector.extract_strided_slice %63 {offsets = [0, 0], sizes = [16, 64], strides = [1, 1]} : vector<144x64xf32> to vector<16x64xf32>
    %c0_45 = arith.constant 0 : index
    %c0_46 = arith.constant 0 : index
    %c0_47 = arith.constant 0 : index
    %65 = vector.load %arg8[%c0_45, %c0_46, %c0_47] : memref<9x64x128xf32, #tpu.memory_space<vmem>>, vector<1x64x128xf32>
    %66 = vector.shape_cast %65 : vector<1x64x128xf32> to vector<64x128xf32>
    %cst_48 = arith.constant dense<0.000000e+00> : vector<16x128xf32>
    %67 = tpu.matmul %64, %66, %cst_48 {dimension_numbers = #tpu.dot_dimension_numbers<[1], [0], [0], [1], [0, 0, 1, 1], [], []>} : vector<16x64xf32>, vector<64x128xf32>, vector<16x128xf32> -> vector<16x128xf32>
    %68 = vector.extract_strided_slice %63 {offsets = [16, 0], sizes = [16, 64], strides = [1, 1]} : vector<144x64xf32> to vector<16x64xf32>
    %c1_49 = arith.constant 1 : index
    %c0_50 = arith.constant 0 : index
    %c0_51 = arith.constant 0 : index
    %69 = vector.load %arg8[%c1_49, %c0_50, %c0_51] : memref<9x64x128xf32, #tpu.memory_space<vmem>>, vector<1x64x128xf32>
    %70 = vector.shape_cast %69 : vector<1x64x128xf32> to vector<64x128xf32>
    %cst_52 = arith.constant dense<0.000000e+00> : vector<16x128xf32>
    %71 = tpu.matmul %68, %70, %cst_52 {dimension_numbers = #tpu.dot_dimension_numbers<[1], [0], [0], [1], [0, 0, 1, 1], [], []>} : vector<16x64xf32>, vector<64x128xf32>, vector<16x128xf32> -> vector<16x128xf32>
    %72 = vector.extract_strided_slice %63 {offsets = [32, 0], sizes = [16, 64], strides = [1, 1]} : vector<144x64xf32> to vector<16x64xf32>
    %c2_53 = arith.constant 2 : index
    %c0_54 = arith.constant 0 : index
    %c0_55 = arith.constant 0 : index
    %73 = vector.load %arg8[%c2_53, %c0_54, %c0_55] : memref<9x64x128xf32, #tpu.memory_space<vmem>>, vector<1x64x128xf32>
    %74 = vector.shape_cast %73 : vector<1x64x128xf32> to vector<64x128xf32>
    %cst_56 = arith.constant dense<0.000000e+00> : vector<16x128xf32>
    %75 = tpu.matmul %72, %74, %cst_56 {dimension_numbers = #tpu.dot_dimension_numbers<[1], [0], [0], [1], [0, 0, 1, 1], [], []>} : vector<16x64xf32>, vector<64x128xf32>, vector<16x128xf32> -> vector<16x128xf32>
    %76 = vector.extract_strided_slice %63 {offsets = [48, 0], sizes = [16, 64], strides = [1, 1]} : vector<144x64xf32> to vector<16x64xf32>
    %c3_57 = arith.constant 3 : index
    %c0_58 = arith.constant 0 : index
    %c0_59 = arith.constant 0 : index
    %77 = vector.load %arg8[%c3_57, %c0_58, %c0_59] : memref<9x64x128xf32, #tpu.memory_space<vmem>>, vector<1x64x128xf32>
    %78 = vector.shape_cast %77 : vector<1x64x128xf32> to vector<64x128xf32>
    %cst_60 = arith.constant dense<0.000000e+00> : vector<16x128xf32>
    %79 = tpu.matmul %76, %78, %cst_60 {dimension_numbers = #tpu.dot_dimension_numbers<[1], [0], [0], [1], [0, 0, 1, 1], [], []>} : vector<16x64xf32>, vector<64x128xf32>, vector<16x128xf32> -> vector<16x128xf32>
    %80 = vector.extract_strided_slice %63 {offsets = [64, 0], sizes = [16, 64], strides = [1, 1]} : vector<144x64xf32> to vector<16x64xf32>
    %c4_61 = arith.constant 4 : index
    %c0_62 = arith.constant 0 : index
    %c0_63 = arith.constant 0 : index
    %81 = vector.load %arg8[%c4_61, %c0_62, %c0_63] : memref<9x64x128xf32, #tpu.memory_space<vmem>>, vector<1x64x128xf32>
    %82 = vector.shape_cast %81 : vector<1x64x128xf32> to vector<64x128xf32>
    %cst_64 = arith.constant dense<0.000000e+00> : vector<16x128xf32>
    %83 = tpu.matmul %80, %82, %cst_64 {dimension_numbers = #tpu.dot_dimension_numbers<[1], [0], [0], [1], [0, 0, 1, 1], [], []>} : vector<16x64xf32>, vector<64x128xf32>, vector<16x128xf32> -> vector<16x128xf32>
    %84 = vector.extract_strided_slice %63 {offsets = [80, 0], sizes = [16, 64], strides = [1, 1]} : vector<144x64xf32> to vector<16x64xf32>
    %c5_65 = arith.constant 5 : index
    %c0_66 = arith.constant 0 : index
    %c0_67 = arith.constant 0 : index
    %85 = vector.load %arg8[%c5_65, %c0_66, %c0_67] : memref<9x64x128xf32, #tpu.memory_space<vmem>>, vector<1x64x128xf32>
    %86 = vector.shape_cast %85 : vector<1x64x128xf32> to vector<64x128xf32>
    %cst_68 = arith.constant dense<0.000000e+00> : vector<16x128xf32>
    %87 = tpu.matmul %84, %86, %cst_68 {dimension_numbers = #tpu.dot_dimension_numbers<[1], [0], [0], [1], [0, 0, 1, 1], [], []>} : vector<16x64xf32>, vector<64x128xf32>, vector<16x128xf32> -> vector<16x128xf32>
    %88 = vector.extract_strided_slice %63 {offsets = [96, 0], sizes = [16, 64], strides = [1, 1]} : vector<144x64xf32> to vector<16x64xf32>
    %c6_69 = arith.constant 6 : index
    %c0_70 = arith.constant 0 : index
    %c0_71 = arith.constant 0 : index
    %89 = vector.load %arg8[%c6_69, %c0_70, %c0_71] : memref<9x64x128xf32, #tpu.memory_space<vmem>>, vector<1x64x128xf32>
    %90 = vector.shape_cast %89 : vector<1x64x128xf32> to vector<64x128xf32>
    %cst_72 = arith.constant dense<0.000000e+00> : vector<16x128xf32>
    %91 = tpu.matmul %88, %90, %cst_72 {dimension_numbers = #tpu.dot_dimension_numbers<[1], [0], [0], [1], [0, 0, 1, 1], [], []>} : vector<16x64xf32>, vector<64x128xf32>, vector<16x128xf32> -> vector<16x128xf32>
    %92 = vector.extract_strided_slice %63 {offsets = [112, 0], sizes = [16, 64], strides = [1, 1]} : vector<144x64xf32> to vector<16x64xf32>
    %c7_73 = arith.constant 7 : index
    %c0_74 = arith.constant 0 : index
    %c0_75 = arith.constant 0 : index
    %93 = vector.load %arg8[%c7_73, %c0_74, %c0_75] : memref<9x64x128xf32, #tpu.memory_space<vmem>>, vector<1x64x128xf32>
    %94 = vector.shape_cast %93 : vector<1x64x128xf32> to vector<64x128xf32>
    %cst_76 = arith.constant dense<0.000000e+00> : vector<16x128xf32>
    %95 = tpu.matmul %92, %94, %cst_76 {dimension_numbers = #tpu.dot_dimension_numbers<[1], [0], [0], [1], [0, 0, 1, 1], [], []>} : vector<16x64xf32>, vector<64x128xf32>, vector<16x128xf32> -> vector<16x128xf32>
    %96 = vector.extract_strided_slice %63 {offsets = [128, 0], sizes = [16, 64], strides = [1, 1]} : vector<144x64xf32> to vector<16x64xf32>
    %c8_77 = arith.constant 8 : index
    %c0_78 = arith.constant 0 : index
    %c0_79 = arith.constant 0 : index
    %97 = vector.load %arg8[%c8_77, %c0_78, %c0_79] : memref<9x64x128xf32, #tpu.memory_space<vmem>>, vector<1x64x128xf32>
    %98 = vector.shape_cast %97 : vector<1x64x128xf32> to vector<64x128xf32>
    %cst_80 = arith.constant dense<0.000000e+00> : vector<16x128xf32>
    %99 = tpu.matmul %96, %98, %cst_80 {dimension_numbers = #tpu.dot_dimension_numbers<[1], [0], [0], [1], [0, 0, 1, 1], [], []>} : vector<16x64xf32>, vector<64x128xf32>, vector<16x128xf32> -> vector<16x128xf32>
    %c0_81 = arith.constant 0 : index
    %c0_82 = arith.constant 0 : index
    %100 = vector.load %arg9[%c0_81, %c0_82] : memref<1x128xf32, #tpu.memory_space<vmem>>, vector<1x128xf32>
    %cst_83 = arith.constant 0.000000e+00 : f32
    %101 = vector.broadcast %cst_83 : f32 to vector<16x128xf32>
    %102 = arith.addf %101, %67 : vector<16x128xf32>
    %103 = arith.addf %102, %71 : vector<16x128xf32>
    %104 = arith.addf %103, %75 : vector<16x128xf32>
    %105 = arith.addf %104, %79 : vector<16x128xf32>
    %106 = arith.addf %105, %83 : vector<16x128xf32>
    %107 = arith.addf %106, %87 : vector<16x128xf32>
    %108 = arith.addf %107, %91 : vector<16x128xf32>
    %109 = arith.addf %108, %95 : vector<16x128xf32>
    %110 = arith.addf %109, %99 : vector<16x128xf32>
    %111 = vector.broadcast %100 : vector<1x128xf32> to vector<16x128xf32>
    %112 = arith.addf %111, %110 : vector<16x128xf32>
    %cst_84 = arith.constant 0.000000e+00 : f32
    %113 = vector.broadcast %cst_84 : f32 to vector<16x128xf32>
    %114 = arith.maximumf %112, %113 : vector<16x128xf32>
    %c0_85 = arith.constant 0 : index
    %c0_86 = arith.constant 0 : index
    %115 = vector.load %arg10[%c0_85, %c0_86] : memref<128x256xf32, #tpu.memory_space<vmem>>, vector<128x256xf32>
    %cst_87 = arith.constant dense<0.000000e+00> : vector<16x256xf32>
    %116 = tpu.matmul %114, %115, %cst_87 {dimension_numbers = #tpu.dot_dimension_numbers<[1], [0], [0], [1], [0, 0, 1, 1], [], []>} : vector<16x128xf32>, vector<128x256xf32>, vector<16x256xf32> -> vector<16x256xf32>
    %c0_88 = arith.constant 0 : index
    %c0_89 = arith.constant 0 : index
    %117 = vector.load %arg11[%c0_88, %c0_89] : memref<16x256xf32, #tpu.memory_space<vmem>>, vector<16x256xf32>
    %118 = arith.mulf %116, %117 : vector<16x256xf32>
    %cst_90 = arith.constant dense<0.000000e+00> : vector<256xf32>
    %119 = vector.multi_reduction <add>, %118, %cst_90 [0] : vector<16x256xf32> to vector<256xf32>
    %120 = vector.shape_cast %119 : vector<256xf32> to vector<1x256xf32>
    %c0_91 = arith.constant 0 : index
    %c0_92 = arith.constant 0 : index
    %121 = vector.load %arg12[%c0_91, %c0_92] : memref<256x16xf32, #tpu.memory_space<vmem>>, vector<256x16xf32>
    %cst_93 = arith.constant dense<0.000000e+00> : vector<1x16xf32>
    %122 = tpu.matmul %120, %121, %cst_93 {dimension_numbers = #tpu.dot_dimension_numbers<[1], [0], [0], [1], [0, 0, 1, 1], [], []>} : vector<1x256xf32>, vector<256x16xf32>, vector<1x16xf32> -> vector<1x16xf32>
    %c0_94 = arith.constant 0 : index
    %c0_95 = arith.constant 0 : index
    %123 = vector.load %arg13[%c0_94, %c0_95] : memref<1x16xf32, #tpu.memory_space<vmem>>, vector<1x16xf32>
    %124 = arith.addf %122, %123 : vector<1x16xf32>
    %c0_96 = arith.constant 0 : index
    %c0_97 = arith.constant 0 : index
    %c0_98 = arith.constant 0 : index
    %125 = vector.load %arg14[%c0_96, %c0_97, %c0_98] : memref<1x1x16xf32, #tpu.memory_space<vmem>>, vector<1x1x16xf32>
    %126 = vector.shape_cast %125 : vector<1x1x16xf32> to vector<1x16xf32>
    %127 = vector.shape_cast %124 : vector<1x16xf32> to vector<1x1x16xf32>
    tpu.vector_store %arg14[%c0_96, %c0_97, %c0_98], %127 {strides = array<i32>} : memref<1x1x16xf32, #tpu.memory_space<vmem>>, vector<1x1x16xf32>,
    return
  }
  func.func @transform_0(%arg0: i32) -> (i32, i32, i32) {
    %c0_i32 = arith.constant 0 : i32
    %c0_i32_0 = arith.constant 0 : i32
    %c0_i32_1 = arith.constant 0 : i32
    return %arg0, %c0_i32, %c0_i32_0 : i32, i32, i32
  }
  func.func @transform_1(%arg0: i32) -> (i32, i32) {
    %c0_i32 = arith.constant 0 : i32
    %c0_i32_0 = arith.constant 0 : i32
    %c0_i32_1 = arith.constant 0 : i32
    return %c0_i32, %c0_i32_0 : i32, i32
  }
  func.func @transform_2(%arg0: i32) -> (i32, i32) {
    %c0_i32 = arith.constant 0 : i32
    %c0_i32_0 = arith.constant 0 : i32
    %c0_i32_1 = arith.constant 0 : i32
    return %c0_i32, %c0_i32_0 : i32, i32
  }
  func.func @transform_3(%arg0: i32) -> (i32, i32) {
    %c0_i32 = arith.constant 0 : i32
    %c0_i32_0 = arith.constant 0 : i32
    %c0_i32_1 = arith.constant 0 : i32
    return %c0_i32, %c0_i32_0 : i32, i32
  }
  func.func @transform_4(%arg0: i32) -> (i32, i32, i32) {
    %c0_i32 = arith.constant 0 : i32
    %c0_i32_0 = arith.constant 0 : i32
    %c0_i32_1 = arith.constant 0 : i32
    %c0_i32_2 = arith.constant 0 : i32
    return %c0_i32, %c0_i32_0, %c0_i32_1 : i32, i32, i32
  }
  func.func @transform_5(%arg0: i32) -> (i32, i32) {
    %c0_i32 = arith.constant 0 : i32
    %c0_i32_0 = arith.constant 0 : i32
    %c0_i32_1 = arith.constant 0 : i32
    return %c0_i32, %c0_i32_0 : i32, i32
  }
  func.func @transform_6(%arg0: i32) -> (i32, i32) {
    %c0_i32 = arith.constant 0 : i32
    %c0_i32_0 = arith.constant 0 : i32
    %c0_i32_1 = arith.constant 0 : i32
    return %c0_i32, %c0_i32_0 : i32, i32
  }
  func.func @transform_7(%arg0: i32) -> (i32, i32, i32) {
    %c0_i32 = arith.constant 0 : i32
    %c0_i32_0 = arith.constant 0 : i32
    %c0_i32_1 = arith.constant 0 : i32
    %c0_i32_2 = arith.constant 0 : i32
    return %c0_i32, %c0_i32_0, %c0_i32_1 : i32, i32, i32
  }
  func.func @transform_8(%arg0: i32) -> (i32, i32) {
    %c0_i32 = arith.constant 0 : i32
    %c0_i32_0 = arith.constant 0 : i32
    %c0_i32_1 = arith.constant 0 : i32
    return %c0_i32, %c0_i32_0 : i32, i32
  }
  func.func @transform_9(%arg0: i32) -> (i32, i32) {
    %c0_i32 = arith.constant 0 : i32
    %c0_i32_0 = arith.constant 0 : i32
    %c0_i32_1 = arith.constant 0 : i32
    return %c0_i32, %c0_i32_0 : i32, i32
  }
  func.func @transform_10(%arg0: i32) -> (i32, i32) {
    %c0_i32 = arith.constant 0 : i32
    %c0_i32_0 = arith.constant 0 : i32
    %c0_i32_1 = arith.constant 0 : i32
    return %c0_i32, %c0_i32_0 : i32, i32
  }
  func.func @transform_11(%arg0: i32) -> (i32, i32) {
    %c0_i32 = arith.constant 0 : i32
    %c0_i32_0 = arith.constant 0 : i32
    %c0_i32_1 = arith.constant 0 : i32
    return %c0_i32, %c0_i32_0 : i32, i32
  }
  func.func @transform_12(%arg0: i32) -> (i32, i32) {
    %c0_i32 = arith.constant 0 : i32
    %c0_i32_0 = arith.constant 0 : i32
    %c0_i32_1 = arith.constant 0 : i32
    return %c0_i32, %c0_i32_0 : i32, i32
  }
  func.func @transform_13(%arg0: i32) -> (i32, i32, i32) {
    %c0_i32 = arith.constant 0 : i32
    %c0_i32_0 = arith.constant 0 : i32
    %c0_i32_1 = arith.constant 0 : i32
    return %arg0, %c0_i32, %c0_i32_0 : i32, i32, i32
  }
}

</mosaic_0001>

<bundles_post_ra>
// kernel: variational_encoder_forward.1
= control target key start
LH: loop header
LB: loop body
LE: loop exit
PB: predicated region body
PF: predicated region fallthrough
CT: control target
= control target key end

     0   :  { %s3118_s25 = smov 0   ;;  %s4631_s0 = inlined_call_operand.vmem [shape: f32[2,256,9], index: 0, kind: input, shape index: {}]   ;;  %s4632_s1 = inlined_call_operand.vmem [shape: f32[9,32], index: 1, kind: input, shape index: {}]   ;;  %s4633_s2 = inlined_call_operand.vmem [shape: f32[1,32], index: 2, kind: input, shape index: {}]   ;;  %s4634_s3 = inlined_call_operand.vmem [shape: f32[576,256], index: 3, kind: input, shape index: {}]   ;;  %s4635_s4 = inlined_call_operand.vmem [shape: f32[9,32,64], index: 4, kind: input, shape index: {}]   ;;  %s4636_s5 = inlined_call_operand.vmem [shape: f32[1,64], index: 5, kind: input, shape index: {}]   ;;  %s4637_s6 = inlined_call_operand.vmem [shape: f32[144,64], index: 6, kind: input, shape index: {}]   ;;  %s4638_s7 = inlined_call_operand.vmem [shape: f32[9,64,128], index: 7, kind: input, shape index: {}]   ;;  %s4639_s8 = inlined_call_operand.vmem [shape: f32[1,128], index: 8, kind: input, shape index: {}]   ;;  %s4640_s9 = inlined_call_operand.vmem [shape: f32[128,256], index: 9, kind: input, shape index: {}]   ;;  %s4641_s10 = inlined_call_operand.vmem [shape: f32[16,256], index: 10, kind: input, shape index: {}]   ;;  %s4642_s11 = inlined_call_operand.vmem [shape: f32[256,16], index: 11, kind: input, shape index: {}]   ;;  %s4643_s12 = inlined_call_operand.vmem [shape: f32[1,16], index: 12, kind: input, shape index: {}]   ;;  %s4644_s13 = inlined_call_operand.vmem [shape: f32[2,1,16], index: 13, kind: output, shape index: {}]  }
   0x1 LB: > { %s2766_s26 = sadd.s32 4294967295, %s3046_s25   ;;  %p2770_p0 = scmp.ge.s32.totalorder %s3046_s25, 1  ;;  %s3046_s25 = sphi %s3118_s25, %s23_s25  }
   0x2   : > { %p387_p1 = scmp.lt.s32.totalorder %s3046_s25, 3 }
   0x4   : > { %p388_p2 = pnand %p2770_p0, %p387_p1 }
   0x6   : > { %391 = sbr.rel (%p388_p2) target bundleno = 1992 (0x7c8), region = 72 }
   0xb   : > { %v470_v0 = vld [vmem:[%s4632_s1 + $0x8] sm:$0x1]  ;;  %vm572_vm0 = vcmask 1040384   ;;  %v469_v1 = vld [vmem:[%s4632_s1] sm:$0xff]  ;;  %p429_p3 = scmp.lt.s32.totalorder %s2766_s26, 1  ;;  %vm475_vm1 = vcmask 72704  }
   0xc   : > { %2773 = vmatpush.msk.msra.mxu0 %vm572_vm0, %v470_v0  ;;  %v3217_v48 = vld [vmem:[%s4633_s2] ss:$0 sm:$0xff]  ;;  %vm1340_vm2 = vcmask 261120   ;;  %vm2055_vm3 = vcmask 523264   ;;  %vm2717_vm4 = vcmask 122880  }
   0xd   : > { %s4674_s26 = smov (!%p429_p3, %s2766_s26), 1 }
   0xe   : > { %591 = vmatpush.msra.mxu0 %v469_v1  ;;  %s3012_s14 = sshll.u32 %s4674_s26, 8 }
   0xf   : > { %s3138_s17 = scalar_lea.vmem %s4631_s0, %s3012_s14  ;;  %s436_s14 = scalar_lea.vmem %s4644_s13, %s4674_s26 }
  0x10   : > { %v437_v2 = vld [vmem:[%s3138_s17] sm:$0xff]  ;;  %v438_v3 = vld [vmem:[%s3138_s17 + $0x8] sm:$0xff]  ;;  %v439_v4 = vld [vmem:[%s3138_s17 + $0x10] sm:$0xff] }
  0x11   : > { %2774 = vmatmul.msk.f32.vlgmr.msra.gmra.mxu0 %vm475_vm1, %v437_v2  ;;  %v440_v5 = vld [vmem:[%s3138_s17 + $0x18] sm:$0xff]  ;;  %v441_v6 = vld [vmem:[%s3138_s17 + $0x20] sm:$0xff]  ;;  %v442_v7 = vld [vmem:[%s3138_s17 + $0x28] sm:$0xff] }
  0x12   : > { %v443_v8 = vld [vmem:[%s3138_s17 + $0x30] sm:$0xff]  ;;  %v444_v9 = vld [vmem:[%s3138_s17 + $0x38] sm:$0xff]  ;;  %v445_v10 = vld [vmem:[%s3138_s17 + $0x40] sm:$0xff] }
  0x13   : > { %v446_v11 = vld [vmem:[%s3138_s17 + $0x48] sm:$0xff]  ;;  %v447_v12 = vld [vmem:[%s3138_s17 + $0x50] sm:$0xff]  ;;  %v448_v13 = vld [vmem:[%s3138_s17 + $0x58] sm:$0xff] }
  0x14   : > { %v449_v14 = vld [vmem:[%s3138_s17 + $0x60] sm:$0xff]  ;;  %v450_v15 = vld [vmem:[%s3138_s17 + $0x68] sm:$0xff]  ;;  %v451_v16 = vld [vmem:[%s3138_s17 + $0x70] sm:$0xff] }
  0x15   : > { %v452_v17 = vld [vmem:[%s3138_s17 + $0x78] sm:$0xff]  ;;  %v453_v19 = vld [vmem:[%s3138_s17 + $0x80] sm:$0xff]  ;;  %v454_v21 = vld [vmem:[%s3138_s17 + $0x88] sm:$0xff] }
  0x16   : > { %v455_v23 = vld [vmem:[%s3138_s17 + $0x90] sm:$0xff]  ;;  %v456_v25 = vld [vmem:[%s3138_s17 + $0x98] sm:$0xff]  ;;  %v457_v27 = vld [vmem:[%s3138_s17 + $0xa0] sm:$0xff] }
  0x17   : > { %v458_v29 = vld [vmem:[%s3138_s17 + $0xa8] sm:$0xff]  ;;  %v459_v31 = vld [vmem:[%s3138_s17 + $0xb0] sm:$0xff]  ;;  %v460_v33 = vld [vmem:[%s3138_s17 + $0xb8] sm:$0xff] }
  0x18   : > { %v461_v35 = vld [vmem:[%s3138_s17 + $0xc0] sm:$0xff]  ;;  %v462_v37 = vld [vmem:[%s3138_s17 + $0xc8] sm:$0xff]  ;;  %v463_v39 = vld [vmem:[%s3138_s17 + $0xd0] sm:$0xff] }
  0x19   : > { %2775 = vmatmul.msk.f32.gmra.mxu0 %vm475_vm1, %v438_v3  ;;  %v464_v41 = vld [vmem:[%s3138_s17 + $0xd8] sm:$0xff]  ;;  %v465_v43 = vld [vmem:[%s3138_s17 + $0xe0] sm:$0xff]  ;;  %v466_v45 = vld [vmem:[%s3138_s17 + $0xe8] sm:$0xff] }
  0x1a   : > { %v467_v47 = vld [vmem:[%s3138_s17 + $0xf0] sm:$0xff]  ;;  %v468_v50 = vld [vmem:[%s3138_s17 + $0xf8] sm:$0xff] }
  0x21   : > { %2776 = vmatmul.msk.f32.gmra.mxu0 %vm475_vm1, %v439_v4 }
  0x29   : > { %2777 = vmatmul.msk.f32.gmra.mxu0 %vm475_vm1, %v440_v5 }
  0x31   : > { %2778 = vmatmul.msk.f32.gmra.mxu0 %vm475_vm1, %v441_v6 }
  0x39   : > { %2779 = vmatmul.msk.f32.gmra.mxu0 %vm475_vm1, %v442_v7 }
  0x41   : > { %2780 = vmatmul.msk.f32.gmra.mxu0 %vm475_vm1, %v443_v8 }
  0x49   : > { %2781 = vmatmul.msk.f32.gmra.mxu0 %vm475_vm1, %v444_v9 }
  0x51   : > { %2782 = vmatmul.msk.f32.gmra.mxu0 %vm475_vm1, %v445_v10 }
  0x59   : > { %2783 = vmatmul.msk.f32.gmra.mxu0 %vm475_vm1, %v446_v11 }
  0x61   : > { %2784 = vmatmul.msk.f32.gmra.mxu0 %vm475_vm1, %v447_v12 }
  0x69   : > { %2785 = vmatmul.msk.f32.gmra.mxu0 %vm475_vm1, %v448_v13 }
  0x71   : > { %2786 = vmatmul.msk.f32.gmra.mxu0 %vm475_vm1, %v449_v14 }
  0x79   : > { %2787 = vmatmul.msk.f32.gmra.mxu0 %vm475_vm1, %v450_v15 }
  0x81   : > { %2788 = vmatmul.msk.f32.gmra.mxu0 %vm475_vm1, %v451_v16 }
  0x89   : > { %2789 = vmatmul.msk.f32.gmra.mxu0 %vm475_vm1, %v452_v17 }
  0x8e   : > { %v3172_v18 = vpop.f32.mrf.mxu0 }
  0x91   : > { %2790 = vmatmul.msk.f32.gmra.mxu0 %vm475_vm1, %v453_v19  ;;  %v594_v19 = vadd.f32 %v3217_v48, %v3172_v18 }
  0x96   : > { %v3176_v20 = vpop.f32.mrf.mxu0 }
  0x97   : > { %v597_v16 = vadd.f32 %v3217_v48, %v3176_v20 }
  0x99   : > { %2791 = vmatmul.msk.f32.gmra.mxu0 %vm475_vm1, %v454_v21 }
  0x9e   : > { %v3180_v22 = vpop.f32.mrf.mxu0 }
  0x9f   : > { %v600_v14 = vadd.f32 %v3217_v48, %v3180_v22  ;;  %v689_v22 = vmax.f32 %v594_v19, 0.0  ;;  %v739_v19 = vld [vmem:[%s4634_s3 + $0x90] sm:$0xff] }
  0xa1   : > { %2792 = vmatmul.msk.f32.gmra.mxu0 %vm475_vm1, %v455_v23  ;;  %v691_v21 = vmax.f32 %v600_v14, 0.0  ;;  %v690_v23 = vmax.f32 %v597_v16, 0.0  ;;  %v735_v14 = vld [vmem:[%s4634_s3 + $0x70] sm:$0xff]  ;;  %v737_v16 = vld [vmem:[%s4634_s3 + $0x80] sm:$0xff] }
  0xa6   : > { %v3184_v24 = vpop.f32.mrf.mxu0 }
  0xa7   : > { %v603_v11 = vadd.f32 %v3217_v48, %v3184_v24 }
  0xa9   : > { %2793 = vmatmul.msk.f32.gmra.mxu0 %vm475_vm1, %v456_v25  ;;  %v692_v17 = vmax.f32 %v603_v11, 0.0  ;;  %v726_v11 = vld [vmem:[%s4634_s3 + $0x28] sm:$0xff] }
  0xae   : > { %v3188_v26 = vpop.f32.mrf.mxu0 }
  0xaf   : > { %v606_v9 = vadd.f32 %v3217_v48, %v3188_v26 }
  0xb1   : > { %2794 = vmatmul.msk.f32.gmra.mxu0 %vm475_vm1, %v457_v27  ;;  %v693_v15 = vmax.f32 %v606_v9, 0.0 }
  0xb6   : > { %v3192_v28 = vpop.f32.mrf.mxu0 }
  0xb7   : > { %v609_v7 = vadd.f32 %v3217_v48, %v3192_v28 }
  0xb9   : > { %2795 = vmatmul.msk.f32.gmra.mxu0 %vm475_vm1, %v458_v29  ;;  %v694_v12 = vmax.f32 %v609_v7, 0.0 }
  0xbe   : > { %v611_v30 = vpop.f32.mrf.mxu0 }
  0xbf   : > { %v612_v5 = vadd.f32 %v3217_v48, %v611_v30 }
  0xc1   : > { %2796 = vmatmul.msk.f32.gmra.mxu0 %vm475_vm1, %v459_v31  ;;  %v695_v10 = vmax.f32 %v612_v5, 0.0  ;;  %v727_v5 = vld [vmem:[%s4634_s3 + $0x30] sm:$0xff] }
  0xc6   : > { %v614_v32 = vpop.f32.mrf.mxu0 }
  0xc7   : > { %v615_v2 = vadd.f32 %v3217_v48, %v614_v32 }
  0xc9   : > { %2797 = vmatmul.msk.f32.gmra.mxu0 %vm475_vm1, %v460_v33  ;;  %v696_v8 = vmax.f32 %v615_v2, 0.0 }
  0xce   : > { %v617_v34 = vpop.f32.mrf.mxu0 }
  0xcf   : > { %v618_v0 = vadd.f32 %v3217_v48, %v617_v34 }
  0xd1   : > { %2798 = vmatmul.msk.f32.gmra.mxu0 %vm475_vm1, %v461_v35  ;;  %v697_v6 = vmax.f32 %v618_v0, 0.0 }
  0xd6   : > { %v620_v36 = vpop.f32.mrf.mxu0 }
  0xd7   : > { %v621_v62 = vadd.f32 %v3217_v48, %v620_v36 }
  0xd9   : > { %2799 = vmatmul.msk.f32.gmra.mxu0 %vm475_vm1, %v462_v37  ;;  %v698_v3 = vmax.f32 %v621_v62, 0.0 }
  0xde   : > { %v623_v38 = vpop.f32.mrf.mxu0 }
  0xdf   : > { %v624_v60 = vadd.f32 %v3217_v48, %v623_v38 }
  0xe1   : > { %2800 = vmatmul.msk.f32.gmra.mxu0 %vm475_vm1, %v463_v39  ;;  %v699_v1 = vmax.f32 %v624_v60, 0.0  ;;  %v721_v39 = vld [vmem:[%s4634_s3] sm:$0xff] }
  0xe6   : > { %v626_v40 = vpop.f32.mrf.mxu0 }
  0xe7   : > { %v627_v57 = vadd.f32 %v3217_v48, %v626_v40 }
  0xe9   : > { %2801 = vmatmul.msk.f32.gmra.mxu0 %vm475_vm1, %v464_v41  ;;  %v700_v63 = vmax.f32 %v627_v57, 0.0 }
  0xee   : > { %v629_v42 = vpop.f32.mrf.mxu0 }
  0xef   : > { %v630_v55 = vadd.f32 %v3217_v48, %v629_v42 }
  0xf1   : > { %2802 = vmatmul.msk.f32.gmra.mxu0 %vm475_vm1, %v465_v43  ;;  %v701_v61 = vmax.f32 %v630_v55, 0.0 }
  0xf6   : > { %v632_v44 = vpop.f32.mrf.mxu0 }
  0xf7   : > { %v633_v53 = vadd.f32 %v3217_v48, %v632_v44 }
  0xf9   : > { %2803 = vmatmul.msk.f32.gmra.mxu0 %vm475_vm1, %v466_v45  ;;  %v702_v58 = vmax.f32 %v633_v53, 0.0 }
  0xfe   : > { %v635_v46 = vpop.f32.mrf.mxu0 }
  0xff   : > { %v636_v51 = vadd.f32 %v3217_v48, %v635_v46 }
 0x101   : > { %2804 = vmatmul.msk.f32.gmra.mxu0 %vm475_vm1, %v467_v47  ;;  %v703_v56 = vmax.f32 %v636_v51, 0.0 }
 0x106   : > { %v638_v49 = vpop.f32.mrf.mxu0 }
 0x107   : > { %v639_v52 = vadd.f32 %v3217_v48, %v638_v49  ;;  %v723_v49 = vld [vmem:[%s4634_s3 + $0x10] sm:$0xff] }
 0x109   : > { %2805 = vmatmul.msk.f32.gmra.mxu0 %vm475_vm1, %v468_v50  ;;  %v704_v54 = vmax.f32 %v639_v52, 0.0 }
 0x10b   : > { %865 = vmatpush.msrb.mxu0 %v704_v54  ;;  %3013 = vmatpush.msra.mxu1 %v704_v54 }
 0x10d   : > { %866 = vmatpush.msrb.mxu0 %v703_v56  ;;  %3014 = vmatpush.msra.mxu1 %v703_v56 }
 0x10e   : > { %v3226_v59 = vpop.f32.mrf.mxu0 }
 0x10f   : > { %867 = vmatpush.msrb.mxu0 %v702_v58  ;;  %3015 = vmatpush.msra.mxu1 %v702_v58  ;;  %v725_v58 = vld [vmem:[%s4634_s3 + $0x20] sm:$0xff] }
 0x111   : > { %868 = vmatpush.msrb.mxu0 %v701_v61  ;;  %3016 = vmatpush.msra.mxu1 %v701_v61 }
 0x113   : > { %869 = vmatpush.msrb.mxu0 %v700_v63  ;;  %3017 = vmatpush.msra.mxu1 %v700_v63 }
 0x115   : > { %870 = vmatpush.msrb.mxu0 %v699_v1  ;;  %3018 = vmatpush.msra.mxu1 %v699_v1 }
 0x116   : > { %v3232_v4 = vpop.f32.mrf.mxu0 }
 0x117   : > { %871 = vmatpush.msrb.mxu0 %v698_v3  ;;  %3019 = vmatpush.msra.mxu1 %v698_v3  ;;  %v645_v2 = vadd.f32 %v3217_v48, %v3232_v4  ;;  %v722_v4 = vld [vmem:[%s4634_s3 + $0x8] sm:$0xff] }
 0x119   : > { %872 = vmatpush.msrb.mxu0 %v697_v6  ;;  %3020 = vmatpush.msra.mxu1 %v697_v6  ;;  %v642_v6 = vadd.f32 %v3217_v48, %v3226_v59  ;;  %v731_v59 = vld [vmem:[%s4634_s3 + $0x50] sm:$0xff] }
 0x11b   : > { %873 = vmatpush.msrb.mxu0 %v696_v8  ;;  %3021 = vmatpush.msra.mxu1 %v696_v8  ;;  %v706_v8 = vmax.f32 %v645_v2, 0.0  ;;  %v705_v9 = vmax.f32 %v642_v6, 0.0 }
 0x11d   : > { %874 = vmatpush.msrb.mxu0 %v695_v10  ;;  %3022 = vmatpush.msra.mxu1 %v695_v10  ;;  %v729_v10 = vld [vmem:[%s4634_s3 + $0x40] sm:$0xff] }
 0x11e   : > { %v3241_v13 = vpop.f32.mrf.mxu0 }
 0x11f   : > { %875 = vmatpush.msrb.mxu0 %v694_v12  ;;  %3023 = vmatpush.msra.mxu1 %v694_v12  ;;  %v648_v0 = vadd.f32 %v3217_v48, %v3241_v13  ;;  %v733_v12 = vld [vmem:[%s4634_s3 + $0x60] sm:$0xff]  ;;  %v728_v13 = vld [vmem:[%s4634_s3 + $0x38] sm:$0xff] }
 0x121   : > { %876 = vmatpush.msrb.mxu0 %v693_v15  ;;  %3024 = vmatpush.msra.mxu1 %v693_v15  ;;  %v707_v7 = vmax.f32 %v648_v0, 0.0  ;;  %v730_v15 = vld [vmem:[%s4634_s3 + $0x48] sm:$0xff] }
 0x122   : > { %v762_v0 = vld [vmem:[%s4634_s3 + $0x148] sm:$0xff] }
 0x123   : > { %877 = vmatpush.msrb.mxu0 %v692_v17  ;;  %3025 = vmatpush.msra.mxu1 %v692_v17  ;;  %v732_v17 = vld [vmem:[%s4634_s3 + $0x58] sm:$0xff] }
 0x125   : > { %878 = vmatpush.msrb.mxu0 %v691_v21  ;;  %3026 = vmatpush.msra.mxu1 %v691_v21  ;;  %v734_v21 = vld [vmem:[%s4634_s3 + $0x68] sm:$0xff] }
 0x126   : > { %v650_v24 = vpop.f32.mrf.mxu0 }
 0x127   : > { %879 = vmatpush.msrb.mxu0 %v690_v23  ;;  %3027 = vmatpush.msra.mxu1 %v690_v23  ;;  %v651_v62 = vadd.f32 %v3217_v48, %v650_v24  ;;  %v741_v23 = vld [vmem:[%s4634_s3 + $0xa0] sm:$0xff]  ;;  %v736_v24 = vld [vmem:[%s4634_s3 + $0x78] sm:$0xff] }
 0x129   : > { %880 = vmatpush.msrb.mxu0 %v689_v22  ;;  %3028 = vmatpush.msra.mxu1 %v689_v22  ;;  %v708_v3 = vmax.f32 %v651_v62, 0.0  ;;  %v743_v22 = vld [vmem:[%s4634_s3 + $0xb0] sm:$0xff] }
 0x12a   : > { %881 = vmatmul.f32.vlgmr.msrb.gmra.mxu0 %v721_v39  ;;  %884 = vmatmul.f32.vlgmr.msra.gmra.mxu1 %v723_v49  ;;  %v752_v39 = vld [vmem:[%s4634_s3 + $0xf8] sm:$0xff]  ;;  %v767_v62 = vld [vmem:[%s4634_s3 + $0x170] sm:$0xff] }
 0x12e   : > { %v653_v25 = vpop.f32.mrf.mxu0 }
 0x12f   : > { %v654_v60 = vadd.f32 %v3217_v48, %v653_v25  ;;  %v738_v25 = vld [vmem:[%s4634_s3 + $0x88] sm:$0xff] }
 0x131   : > { %v709_v1 = vmax.f32 %v654_v60, 0.0 }
 0x132   : > { %887 = vmatmul.f32.gmra.mxu1 %v725_v58 }
 0x136   : > { %v656_v20 = vpop.f32.mrf.mxu0 }
 0x137   : > { %v657_v56 = vadd.f32 %v3217_v48, %v656_v20  ;;  %v745_v20 = vld [vmem:[%s4634_s3 + $0xc0] sm:$0xff] }
 0x139   : > { %v710_v63 = vmax.f32 %v657_v56, 0.0  ;;  %v765_v56 = vld [vmem:[%s4634_s3 + $0x160] sm:$0xff] }
 0x13a   : > { %890 = vmatmul.f32.gmra.mxu1 %v727_v5 }
 0x13e   : > { %v659_v26 = vpop.f32.mrf.mxu0 }
 0x13f   : > { %v660_v54 = vadd.f32 %v3217_v48, %v659_v26  ;;  %v740_v26 = vld [vmem:[%s4634_s3 + $0x98] sm:$0xff] }
 0x141   : > { %v711_v61 = vmax.f32 %v660_v54, 0.0 }
 0x142   : > { %893 = vmatmul.f32.gmra.mxu1 %v729_v10 }
 0x146   : > { %v662_v27 = vpop.f32.mrf.mxu0 }
 0x147   : > { %v663_v52 = vadd.f32 %v3217_v48, %v662_v27  ;;  %v747_v27 = vld [vmem:[%s4634_s3 + $0xd0] sm:$0xff] }
 0x149   : > { %v712_v57 = vmax.f32 %v663_v52, 0.0  ;;  %v758_v52 = vld [vmem:[%s4634_s3 + $0x128] sm:$0xff] }
 0x14a   : > { %896 = vmatmul.f32.gmra.mxu1 %v731_v59  ;;  %v771_v59 = vld [vmem:[%s4634_s3 + $0x190] sm:$0xff] }
 0x14e   : > { %v665_v28 = vpop.f32.mrf.mxu0 }
 0x14f   : > { %v666_v50 = vadd.f32 %v3217_v48, %v665_v28  ;;  %v742_v28 = vld [vmem:[%s4634_s3 + $0xa8] sm:$0xff] }
 0x151   : > { %v713_v55 = vmax.f32 %v666_v50, 0.0 }
 0x152   : > { %899 = vmatmul.f32.gmra.mxu1 %v733_v12 }
 0x156   : > { %v668_v29 = vpop.f32.mrf.mxu0 }
 0x157   : > { %v669_v46 = vadd.f32 %v3217_v48, %v668_v29  ;;  %v749_v29 = vld [vmem:[%s4634_s3 + $0xe0] sm:$0xff] }
 0x159   : > { %v714_v53 = vmax.f32 %v669_v46, 0.0  ;;  %v756_v46 = vld [vmem:[%s4634_s3 + $0x118] sm:$0xff] }
 0x15a   : > { %902 = vmatmul.f32.gmra.mxu1 %v735_v14 }
 0x15e   : > { %v671_v30 = vpop.f32.mrf.mxu0 }
 0x15f   : > { %v672_v44 = vadd.f32 %v3217_v48, %v671_v30  ;;  %v744_v30 = vld [vmem:[%s4634_s3 + $0xb8] sm:$0xff] }
 0x161   : > { %v715_v51 = vmax.f32 %v672_v44, 0.0 }
 0x162   : > { %905 = vmatmul.f32.gmra.mxu1 %v737_v16  ;;  %v768_v16 = vld [vmem:[%s4634_s3 + $0x178] sm:$0xff] }
 0x166   : > { %v674_v18 = vpop.f32.mrf.mxu0 }
 0x167   : > { %v675_v42 = vadd.f32 %v3217_v48, %v674_v18  ;;  %v751_v18 = vld [vmem:[%s4634_s3 + $0xf0] sm:$0xff] }
 0x169   : > { %v716_v47 = vmax.f32 %v675_v42, 0.0  ;;  %v754_v42 = vld [vmem:[%s4634_s3 + $0x108] sm:$0xff] }
 0x16a   : > { %908 = vmatmul.f32.gmra.mxu1 %v739_v19 }
 0x16e   : > { %v677_v31 = vpop.f32.mrf.mxu0 }
 0x16f   : > { %v678_v40 = vadd.f32 %v3217_v48, %v677_v31  ;;  %v746_v31 = vld [vmem:[%s4634_s3 + $0xc8] sm:$0xff] }
 0x171   : > { %v717_v45 = vmax.f32 %v678_v40, 0.0 }
 0x172   : > { %911 = vmatmul.f32.gmra.mxu1 %v741_v23  ;;  %v775_v23 = vld [vmem:[%s4634_s3 + $0x1b0] sm:$0xff] }
 0x176   : > { %v680_v32 = vpop.f32.mrf.mxu0 }
 0x177   : > { %v681_v37 = vadd.f32 %v3217_v48, %v680_v32  ;;  %v753_v32 = vld [vmem:[%s4634_s3 + $0x100] sm:$0xff] }
 0x179   : > { %v718_v43 = vmax.f32 %v681_v37, 0.0 }
 0x17a   : > { %914 = vmatmul.f32.gmra.mxu1 %v743_v22 }
 0x17e   : > { %v683_v33 = vpop.f32.mrf.mxu0 }
 0x17f   : > { %v684_v35 = vadd.f32 %v3217_v48, %v683_v33  ;;  %v748_v33 = vld [vmem:[%s4634_s3 + $0xd8] sm:$0xff] }
 0x181   : > { %v719_v41 = vmax.f32 %v684_v35, 0.0  ;;  %v755_v35 = vld [vmem:[%s4634_s3 + $0x110] sm:$0xff] }
 0x182   : > { %917 = vmatmul.f32.gmra.mxu1 %v745_v20 }
 0x186   : > { %v686_v34 = vpop.f32.mrf.mxu0 }
 0x187   : > { %v687_v36 = vadd.f32 %v3217_v48, %v686_v34  ;;  %v724_v48 = vld [vmem:[%s4634_s3 + $0x18] sm:$0xff] }
 0x189   : > { %v720_v38 = vmax.f32 %v687_v36, 0.0  ;;  %v750_v36 = vld [vmem:[%s4634_s3 + $0xe8] sm:$0xff] }
 0x18a   : > { %920 = vmatmul.f32.gmra.mxu1 %v747_v27  ;;  %v772_v27 = vld [vmem:[%s4634_s3 + $0x198] sm:$0xff] }
 0x18b   : > { %1098 = vmatpush.msra.mxu2 %v720_v38  ;;  %v757_v38 = vld [vmem:[%s4634_s3 + $0x120] sm:$0xff] }
 0x18d   : > { %1099 = vmatpush.msra.mxu2 %v719_v41  ;;  %v759_v41 = vld [vmem:[%s4634_s3 + $0x130] sm:$0xff] }
 0x18f   : > { %1100 = vmatpush.msra.mxu2 %v718_v43 }
 0x191   : > { %1101 = vmatpush.msra.mxu2 %v717_v45  ;;  %v761_v45 = vld [vmem:[%s4634_s3 + $0x140] sm:$0xff] }
 0x192   : > { %923 = vmatmul.f32.gmra.mxu1 %v749_v29 }
 0x193   : > { %1102 = vmatpush.msra.mxu2 %v716_v47 }
 0x195   : > { %1103 = vmatpush.msra.mxu2 %v715_v51  ;;  %v763_v51 = vld [vmem:[%s4634_s3 + $0x150] sm:$0xff] }
 0x197   : > { %1104 = vmatpush.msra.mxu2 %v714_v53 }
 0x199   : > { %1105 = vmatpush.msra.mxu2 %v713_v55 }
 0x19a   : > { %926 = vmatmul.f32.gmra.mxu1 %v751_v18  ;;  %v779_v18 = vld [vmem:[%s4634_s3 + $0x1d0] sm:$0xff] }
 0x19b   : > { %1106 = vmatpush.msra.mxu2 %v712_v57  ;;  %v760_v57 = vld [vmem:[%s4634_s3 + $0x138] sm:$0xff] }
 0x19d   : > { %1107 = vmatpush.msra.mxu2 %v711_v61 }
 0x19f   : > { %1108 = vmatpush.msra.mxu2 %v710_v63  ;;  %v2809_v63 = vld [vmem:[%s4635_s4 + $0x38] sm:$0xff] }
 0x1a0   : > { %1377 = vmatpush.msra.mxu3 %v2809_v63 }
 0x1a1   : > { %1109 = vmatpush.msra.mxu2 %v709_v1  ;;  %v2808_v1 = vld [vmem:[%s4635_s4 + $0x30] sm:$0xff] }
 0x1a2   : > { %929 = vmatmul.f32.gmra.mxu1 %v753_v32  ;;  %1378 = vmatpush.msra.mxu3 %v2808_v1  ;;  %v789_v1 = vld [vmem:[%s4634_s3 + $0x220] sm:$0xff] }
 0x1a3   : > { %1110 = vmatpush.msra.mxu2 %v708_v3  ;;  %v2807_v3 = vld [vmem:[%s4635_s4 + $0x28] sm:$0xff] }
 0x1a4   : > { %1379 = vmatpush.msra.mxu3 %v2807_v3 }
 0x1a5   : > { %1111 = vmatpush.msra.mxu2 %v707_v7  ;;  %v2806_v7 = vld [vmem:[%s4635_s4 + $0x20] sm:$0xff] }
 0x1a6   : > { %1380 = vmatpush.msra.mxu3 %v2806_v7 }
 0x1a7   : > { %1112 = vmatpush.msra.mxu2 %v706_v8  ;;  %v885_v34 = vpop.f32.mrf.mxu1  ;;  %v769_v8 = vld [vmem:[%s4634_s3 + $0x180] sm:$0xff] }
 0x1a9   : > { %1113 = vmatpush.msra.mxu2 %v705_v9  ;;  %v764_v9 = vld [vmem:[%s4634_s3 + $0x158] sm:$0xff] }
 0x1aa   : > { %1114 = vmatmul.f32.vlgmr.msra.gmra.mxu2 %v722_v4  ;;  %932 = vmatmul.f32.gmra.mxu1 %v755_v35  ;;  %v781_v35 = vld [vmem:[%s4634_s3 + $0x1e0] sm:$0xff] }
 0x1af   : > { %v888_v37 = vpop.f32.mrf.mxu1 }
 0x1b2   : > { %1117 = vmatmul.f32.gmra.mxu2 %v724_v48  ;;  %935 = vmatmul.f32.gmra.mxu1 %v757_v38 }
 0x1b7   : > { %v891_v40 = vpop.f32.mrf.mxu1 }
 0x1ba   : > { %1120 = vmatmul.f32.gmra.mxu2 %v726_v11  ;;  %938 = vmatmul.f32.gmra.mxu1 %v759_v41  ;;  %v766_v11 = vld [vmem:[%s4634_s3 + $0x168] sm:$0xff] }
 0x1bb   : > { %v778_v41 = vld [vmem:[%s4634_s3 + $0x1c8] sm:$0xff] }
 0x1bf   : > { %v894_v43 = vpop.f32.mrf.mxu1 }
 0x1c2   : > { %1123 = vmatmul.f32.gmra.mxu2 %v728_v13  ;;  %941 = vmatmul.f32.gmra.mxu1 %v761_v45 }
 0x1c7   : > { %v897_v47 = vpop.f32.mrf.mxu1 }
 0x1ca   : > { %1126 = vmatmul.f32.gmra.mxu2 %v730_v15  ;;  %944 = vmatmul.f32.gmra.mxu1 %v763_v51  ;;  %v773_v15 = vld [vmem:[%s4634_s3 + $0x1a0] sm:$0xff] }
 0x1cb   : > { %v2818_v51 = vld [vmem:[%s4635_s4 + $0x40] sm:$0xff] }
 0x1cf   : > { %v900_v53 = vpop.f32.mrf.mxu1 }
 0x1d2   : > { %1129 = vmatmul.f32.gmra.mxu2 %v732_v17  ;;  %947 = vmatmul.f32.gmra.mxu1 %v765_v56 }
 0x1d7   : > { %v903_v58 = vpop.f32.mrf.mxu1 }
 0x1da   : > { %1132 = vmatmul.f32.gmra.mxu2 %v734_v21  ;;  %950 = vmatmul.f32.gmra.mxu1 %v767_v62 }
 0x1df   : > { %v906_v2 = vpop.f32.mrf.mxu1 }
 0x1e2   : > { %1135 = vmatmul.f32.gmra.mxu2 %v736_v24  ;;  %953 = vmatmul.f32.gmra.mxu1 %v769_v8  ;;  %v770_v24 = vld [vmem:[%s4634_s3 + $0x188] sm:$0xff]  ;;  %v791_v8 = vld [vmem:[%s4634_s3 + $0x230] sm:$0xff] }
 0x1e7   : > { %v909_v4 = vpop.f32.mrf.mxu1 }
 0x1ea   : > { %1138 = vmatmul.f32.gmra.mxu2 %v738_v25  ;;  %956 = vmatmul.f32.gmra.mxu1 %v771_v59 }
 0x1ef   : > { %v912_v12 = vpop.f32.mrf.mxu1 }
 0x1f2   : > { %1141 = vmatmul.f32.gmra.mxu2 %v740_v26  ;;  %959 = vmatmul.f32.gmra.mxu1 %v773_v15  ;;  %v777_v26 = vld [vmem:[%s4634_s3 + $0x1c0] sm:$0xff] }
 0x1f7   : > { %v915_v17 = vpop.f32.mrf.mxu1 }
 0x1fa   : > { %1144 = vmatmul.f32.gmra.mxu2 %v742_v28  ;;  %962 = vmatmul.f32.gmra.mxu1 %v775_v23 }
 0x1ff   : > { %v918_v22 = vpop.f32.mrf.mxu1 }
 0x202   : > { %1147 = vmatmul.f32.gmra.mxu2 %v744_v30  ;;  %965 = vmatmul.f32.gmra.mxu1 %v777_v26 }
 0x207   : > { %v921_v28 = vpop.f32.mrf.mxu1 }
 0x20a   : > { %1150 = vmatmul.f32.gmra.mxu2 %v746_v31  ;;  %v774_v31 = vld [vmem:[%s4634_s3 + $0x1a8] sm:$0xff]  ;;  %968 = vmatmul.f32.gmra.mxu1 %v779_v18  ;;  %v2833_v18 = vld [vmem:[%s4635_s4 + $0x78] sm:$0xff] }
 0x20f   : > { %v924_v32 = vpop.f32.mrf.mxu1 }
 0x212   : > { %1153 = vmatmul.f32.gmra.mxu2 %v748_v33  ;;  %971 = vmatmul.f32.gmra.mxu1 %v781_v35 }
 0x21a   : > { %1156 = vmatmul.f32.gmra.mxu2 %v750_v36  ;;  %v776_v36 = vld [vmem:[%s4634_s3 + $0x1b8] sm:$0xff] }
 0x222   : > { %1159 = vmatmul.f32.gmra.mxu2 %v752_v39 }
 0x22a   : > { %1162 = vmatmul.f32.gmra.mxu2 %v754_v42  ;;  %v2821_v42 = vld [vmem:[%s4635_s4 + $0x58] sm:$0xff] }
 0x22b   : > { %1447 = vmatpush.msrb.mxu3 %v2821_v42  ;;  %v803_v42 = vld [vmem:[%s4634_s3 + $0x290] sm:$0xff] }
 0x22d   : > { %v3379_v44 = vpop.f32.mrf.mxu2 }
 0x232   : > { %1165 = vmatmul.f32.gmra.mxu2 %v756_v46  ;;  %v2819_v46 = vld [vmem:[%s4635_s4 + $0x48] sm:$0xff] }
 0x235   : > { %v1118_v49 = vpop.f32.mrf.mxu2 }
 0x236   : > { %v3387_v50 = vadd.f32 %v1118_v49, %v885_v34 }
 0x23a   : > { %1168 = vmatmul.f32.gmra.mxu2 %v758_v52  ;;  %v785_v52 = vld [vmem:[%s4634_s3 + $0x200] sm:$0xff] }
 0x23d   : > { %v1121_v54 = vpop.f32.mrf.mxu2 }
 0x23e   : > { %v3395_v55 = vadd.f32 %v1121_v54, %v888_v37  ;;  %v927_v37 = vpop.f32.mrf.mxu1 }
 0x242   : > { %1171 = vmatmul.f32.gmra.mxu2 %v760_v57 }
 0x245   : > { %v1124_v60 = vpop.f32.mrf.mxu2 }
 0x246   : > { %v3403_v61 = vadd.f32 %v1124_v60, %v891_v40  ;;  %v783_v40 = vld [vmem:[%s4634_s3 + $0x1f0] sm:$0xff]  ;;  %v930_v45 = vpop.f32.mrf.mxu1  ;;  %v782_v60 = vld [vmem:[%s4634_s3 + $0x1e8] sm:$0xff] }
 0x247   : > { %974 = vmatmul.f32.gmra.mxu1 %v783_v40 }
 0x24a   : > { %1174 = vmatmul.f32.gmra.mxu2 %v762_v0 }
 0x24d   : > { %v1127_v5 = vpop.f32.mrf.mxu2 }
 0x24e   : > { %v3420_v6 = vadd.f32 %v1127_v5, %v894_v43  ;;  %v2820_v43 = vld [vmem:[%s4635_s4 + $0x50] sm:$0xff]  ;;  %v933_v54 = vpop.f32.mrf.mxu1 }
 0x24f   : > { %1448 = vmatpush.msrb.mxu3 %v2820_v43  ;;  %977 = vmatmul.f32.gmra.mxu1 %v785_v52  ;;  %v798_v43 = vld [vmem:[%s4634_s3 + $0x268] sm:$0xff] }
 0x251   : > { %1449 = vmatpush.msrb.mxu3 %v2819_v46 }
 0x252   : > { %1177 = vmatmul.f32.gmra.mxu2 %v764_v9  ;;  %v786_v9 = vld [vmem:[%s4634_s3 + $0x208] sm:$0xff] }
 0x253   : > { %1450 = vmatpush.msrb.mxu3 %v2818_v51  ;;  %v800_v51 = vld [vmem:[%s4634_s3 + $0x278] sm:$0xff] }
 0x255   : > { %v1130_v10 = vpop.f32.mrf.mxu2 }
 0x256   : > { %v3431_v48 = vadd.f32 %v1130_v10, %v897_v47  ;;  %v936_v62 = vpop.f32.mrf.mxu1 }
 0x25a   : > { %1180 = vmatmul.f32.gmra.mxu2 %v766_v11  ;;  %v793_v11 = vld [vmem:[%s4634_s3 + $0x240] sm:$0xff] }
 0x25d   : > { %v1133_v13 = vpop.f32.mrf.mxu2 }
 0x25e   : > { %v3439_v14 = vadd.f32 %v1133_v13, %v900_v53  ;;  %v780_v53 = vld [vmem:[%s4634_s3 + $0x1d8] sm:$0xff]  ;;  %v939_v3 = vpop.f32.mrf.mxu1 }
 0x262   : > { %1183 = vmatmul.f32.gmra.mxu2 %v768_v16 }
 0x265   : > { %v1136_v19 = vpop.f32.mrf.mxu2 }
 0x266   : > { %v3447_v21 = vadd.f32 %v1136_v19, %v903_v58  ;;  %v787_v58 = vld [vmem:[%s4634_s3 + $0x210] sm:$0xff]  ;;  %v790_v19 = vld [vmem:[%s4634_s3 + $0x228] sm:$0xff] }
 0x267   : > { %980 = vmatmul.f32.gmra.mxu1 %v787_v58 }
 0x26a   : > { %1186 = vmatmul.f32.gmra.mxu2 %v770_v24 }
 0x26d   : > { %v1139_v25 = vpop.f32.mrf.mxu2 }
 0x26e   : > { %v1140_v20 = vadd.f32 %v1139_v25, %v906_v2  ;;  %v784_v2 = vld [vmem:[%s4634_s3 + $0x1f8] sm:$0xff]  ;;  %v797_v25 = vld [vmem:[%s4634_s3 + $0x260] sm:$0xff] }
 0x26f   : > { %983 = vmatmul.f32.gmra.mxu1 %v789_v1 }
 0x270   : > { %2810 = vmatmul.msk.f32.vlgmr.msra.gmra.mxu3 %vm1340_vm2, %v1140_v20  ;;  %v792_v20 = vld [vmem:[%s4634_s3 + $0x238] sm:$0xff] }
 0x271   : > { %1517 = vmatpush.msra.mxu3 %v2833_v18  ;;  %v819_v18 = vld [vmem:[%s4634_s3 + $0x310] sm:$0xff] }
 0x272   : > { %1189 = vmatmul.f32.gmra.mxu2 %v772_v27 }
 0x275   : > { %v1142_v29 = vpop.f32.mrf.mxu2 }
 0x276   : > { %v1143_v30 = vadd.f32 %v1142_v29, %v909_v4  ;;  %v942_v4 = vpop.f32.mrf.mxu1  ;;  %v799_v29 = vld [vmem:[%s4634_s3 + $0x270] sm:$0xff] }
 0x277   : > { %986 = vmatmul.f32.gmra.mxu1 %v791_v8 }
 0x278   : > { %2811 = vmatmul.msk.f32.gmra.mxu3 %vm1340_vm2, %v1143_v30  ;;  %v794_v30 = vld [vmem:[%s4634_s3 + $0x248] sm:$0xff] }
 0x27a   : > { %1192 = vmatmul.f32.gmra.mxu2 %v774_v31  ;;  %v2832_v31 = vld [vmem:[%s4635_s4 + $0x70] sm:$0xff] }
 0x27b   : > { %1518 = vmatpush.msra.mxu3 %v2832_v31  ;;  %v814_v31 = vld [vmem:[%s4634_s3 + $0x2e8] sm:$0xff] }
 0x27d   : > { %v1145_v33 = vpop.f32.mrf.mxu2 }
 0x27e   : > { %v1146_v34 = vadd.f32 %v1145_v33, %v912_v12  ;;  %v788_v12 = vld [vmem:[%s4634_s3 + $0x218] sm:$0xff]  ;;  %v945_v13 = vpop.f32.mrf.mxu1  ;;  %v2831_v33 = vld [vmem:[%s4635_s4 + $0x68] sm:$0xff] }
 0x27f   : > { %989 = vmatmul.f32.gmra.mxu1 %v793_v11  ;;  %1519 = vmatpush.msra.mxu3 %v2831_v33 }
 0x280   : > { %2812 = vmatmul.msk.f32.gmra.mxu3 %vm1340_vm2, %v1146_v34 }
 0x282   : > { %1195 = vmatmul.f32.gmra.mxu2 %v776_v36  ;;  %v2830_v36 = vld [vmem:[%s4635_s4 + $0x60] sm:$0xff] }
 0x283   : > { %1520 = vmatpush.msra.mxu3 %v2830_v36  ;;  %v816_v36 = vld [vmem:[%s4634_s3 + $0x2f8] sm:$0xff] }
 0x285   : > { %v1148_v38 = vpop.f32.mrf.mxu2 }
 0x286   : > { %v1149_v39 = vadd.f32 %v1148_v38, %v915_v17  ;;  %v795_v17 = vld [vmem:[%s4634_s3 + $0x250] sm:$0xff]  ;;  %v948_v23 = vpop.f32.mrf.mxu1  ;;  %v796_v38 = vld [vmem:[%s4634_s3 + $0x258] sm:$0xff] }
 0x287   : > { %992 = vmatmul.f32.gmra.mxu1 %v795_v17  ;;  %v2845_v17 = vld [vmem:[%s4635_s4 + $0x98] sm:$0xff] }
 0x288   : > { %2813 = vmatmul.msk.f32.gmra.mxu3 %vm1340_vm2, %v1149_v39 }
 0x28a   : > { %1198 = vmatmul.f32.gmra.mxu2 %v778_v41 }
 0x28d   : > { %v1151_v47 = vpop.f32.mrf.mxu2 }
 0x28e   : > { %v1152_v49 = vadd.f32 %v1151_v47, %v918_v22  ;;  %v951_v26 = vpop.f32.mrf.mxu1 }
 0x28f   : > { %995 = vmatmul.f32.gmra.mxu1 %v797_v25 }
 0x290   : > { %2814 = vmatmul.msk.f32.gmra.mxu3 %vm1340_vm2, %v1152_v49  ;;  %v805_v49 = vld [vmem:[%s4634_s3 + $0x2a0] sm:$0xff] }
 0x292   : > { %1201 = vmatmul.f32.gmra.mxu2 %v780_v53 }
 0x295   : > { %v1154_v56 = vpop.f32.mrf.mxu2 }
 0x296   : > { %v1155_v57 = vadd.f32 %v1154_v56, %v921_v28  ;;  %v807_v56 = vld [vmem:[%s4634_s3 + $0x2b0] sm:$0xff] }
 0x297   : > { %998 = vmatmul.f32.gmra.mxu1 %v799_v29 }
 0x298   : > { %2815 = vmatmul.msk.f32.gmra.mxu3 %vm1340_vm2, %v1155_v57  ;;  %v802_v57 = vld [vmem:[%s4634_s3 + $0x288] sm:$0xff] }
 0x29a   : > { %1204 = vmatmul.f32.gmra.mxu2 %v782_v60 }
 0x29d   : > { %v1157_v63 = vpop.f32.mrf.mxu2 }
 0x29e   : > { %v1158_v0 = vadd.f32 %v1157_v63, %v924_v32  ;;  %v954_v32 = vpop.f32.mrf.mxu1  ;;  %v809_v63 = vld [vmem:[%s4634_s3 + $0x2c0] sm:$0xff] }
 0x2a0   : > { %2816 = vmatmul.msk.f32.gmra.mxu3 %vm1340_vm2, %v1158_v0  ;;  %v804_v0 = vld [vmem:[%s4634_s3 + $0x298] sm:$0xff] }
 0x2a2   : > { %1207 = vmatmul.f32.gmra.mxu2 %v784_v2 }
 0x2a5   : > { %v1160_v5 = vpop.f32.mrf.mxu2 }
 0x2a6   : > { %v1161_v7 = vadd.f32 %v1160_v5, %v927_v37  ;;  %v801_v37 = vld [vmem:[%s4634_s3 + $0x280] sm:$0xff]  ;;  %v957_v39 = vpop.f32.mrf.mxu1  ;;  %v811_v5 = vld [vmem:[%s4634_s3 + $0x2d0] sm:$0xff] }
 0x2a7   : > { %1001 = vmatmul.f32.gmra.mxu1 %v801_v37 }
 0x2a8   : > { %2817 = vmatmul.msk.f32.gmra.mxu3 %vm1340_vm2, %v1161_v7  ;;  %v806_v7 = vld [vmem:[%s4634_s3 + $0x2a8] sm:$0xff] }
 0x2aa   : > { %1210 = vmatmul.f32.gmra.mxu2 %v786_v9 }
 0x2ad   : > { %v1163_v10 = vpop.f32.mrf.mxu2 }
 0x2ae   : > { %v1164_v59 = vadd.f32 %v1163_v10, %v930_v45  ;;  %v960_v45 = vpop.f32.mrf.mxu1  ;;  %v813_v10 = vld [vmem:[%s4634_s3 + $0x2e0] sm:$0xff] }
 0x2af   : > { %1004 = vmatmul.f32.gmra.mxu1 %v803_v42  ;;  %v818_v42 = vld [vmem:[%s4634_s3 + $0x308] sm:$0xff] }
 0x2b0   : > { %2822 = vmatmul.msk.f32.vlgmr.msrb.gmra.mxu3 %vm1340_vm2, %v1164_v59  ;;  %v808_v59 = vld [vmem:[%s4634_s3 + $0x2b8] sm:$0xff] }
 0x2b1   : > { %1587 = vmatpush.msrb.mxu3 %v2845_v17  ;;  %v833_v17 = vld [vmem:[%s4634_s3 + $0x380] sm:$0xff] }
 0x2b2   : > { %1213 = vmatmul.f32.gmra.mxu2 %v788_v12 }
 0x2b5   : > { %v1166_v15 = vpop.f32.mrf.mxu2 }
 0x2b6   : > { %v1167_v16 = vadd.f32 %v1166_v15, %v933_v54  ;;  %v963_v52 = vpop.f32.mrf.mxu1  ;;  %v815_v15 = vld [vmem:[%s4634_s3 + $0x2f0] sm:$0xff] }
 0x2b7   : > { %1007 = vmatmul.f32.gmra.mxu1 %v805_v49  ;;  %v825_v49 = vld [vmem:[%s4634_s3 + $0x340] sm:$0xff] }
 0x2b8   : > { %2823 = vmatmul.msk.f32.gmra.mxu3 %vm1340_vm2, %v1167_v16  ;;  %v810_v16 = vld [vmem:[%s4634_s3 + $0x2c8] sm:$0xff] }
 0x2ba   : > { %1216 = vmatmul.f32.gmra.mxu2 %v790_v19  ;;  %v2844_v19 = vld [vmem:[%s4635_s4 + $0x90] sm:$0xff] }
 0x2bb   : > { %1588 = vmatpush.msrb.mxu3 %v2844_v19  ;;  %v828_v19 = vld [vmem:[%s4634_s3 + $0x358] sm:$0xff] }
 0x2bd   : > { %v1169_v24 = vpop.f32.mrf.mxu2 }
 0x2be   : > { %v1170_v22 = vadd.f32 %v1169_v24, %v936_v62  ;;  %v966_v58 = vpop.f32.mrf.mxu1  ;;  %v2843_v24 = vld [vmem:[%s4635_s4 + $0x88] sm:$0xff] }
 0x2bf   : > { %1010 = vmatmul.f32.gmra.mxu1 %v807_v56  ;;  %1589 = vmatpush.msrb.mxu3 %v2843_v24 }
 0x2c0   : > { %2824 = vmatmul.msk.f32.gmra.mxu3 %vm1340_vm2, %v1170_v22 }
 0x2c2   : > { %1219 = vmatmul.f32.gmra.mxu2 %v792_v20  ;;  %v2842_v20 = vld [vmem:[%s4635_s4 + $0x80] sm:$0xff] }
 0x2c3   : > { %1590 = vmatpush.msrb.mxu3 %v2842_v20  ;;  %v835_v20 = vld [vmem:[%s4634_s3 + $0x390] sm:$0xff] }
 0x2c5   : > { %v1172_v27 = vpop.f32.mrf.mxu2 }
 0x2c6   : > { %v1173_v28 = vadd.f32 %v1172_v27, %v939_v3  ;;  %v969_v1 = vpop.f32.mrf.mxu1  ;;  %v812_v27 = vld [vmem:[%s4634_s3 + $0x2d8] sm:$0xff] }
 0x2c7   : > { %1013 = vmatmul.f32.gmra.mxu1 %v809_v63 }
 0x2c8   : > { %2825 = vmatmul.msk.f32.gmra.mxu3 %vm1340_vm2, %v1173_v28 }
 0x2ca   : > { %1222 = vmatmul.f32.gmra.mxu2 %v794_v30 }
 0x2cd   : > { %v1175_v34 = vpop.f32.mrf.mxu2 }
 0x2ce   : > { %v1176_v35 = vadd.f32 %v1175_v34, %v942_v4  ;;  %v972_v8 = vpop.f32.mrf.mxu1 }
 0x2cf   : > { %1016 = vmatmul.f32.gmra.mxu1 %v811_v5 }
 0x2d0   : > { %2826 = vmatmul.msk.f32.gmra.mxu3 %vm1340_vm2, %v1176_v35  ;;  %v821_v35 = vld [vmem:[%s4634_s3 + $0x320] sm:$0xff] }
 0x2d2   : > { %1225 = vmatmul.f32.gmra.mxu2 %v796_v38 }
 0x2d5   : > { %v1178_v40 = vpop.f32.mrf.mxu2 }
 0x2d6   : > { %v1179_v41 = vadd.f32 %v1178_v40, %v945_v13  ;;  %v975_v11 = vpop.f32.mrf.mxu1 }
 0x2d7   : > { %1019 = vmatmul.f32.gmra.mxu1 %v813_v10 }
 0x2d8   : > { %2827 = vmatmul.msk.f32.gmra.mxu3 %vm1340_vm2, %v1179_v41  ;;  %v823_v41 = vld [vmem:[%s4634_s3 + $0x330] sm:$0xff] }
 0x2da   : > { %1228 = vmatmul.f32.gmra.mxu2 %v798_v43 }
 0x2dd   : > { %v1181_v46 = vpop.f32.mrf.mxu2 }
 0x2de   : > { %v1182_v47 = vadd.f32 %v1181_v46, %v948_v23  ;;  %v978_v23 = vpop.f32.mrf.mxu1 }
 0x2df   : > { %1022 = vmatmul.f32.gmra.mxu1 %v815_v15 }
 0x2e0   : > { %2828 = vmatmul.msk.f32.gmra.mxu3 %vm1340_vm2, %v1182_v47 }
 0x2e2   : > { %1231 = vmatmul.f32.gmra.mxu2 %v800_v51  ;;  %v820_v51 = vld [vmem:[%s4634_s3 + $0x318] sm:$0xff] }
 0x2e5   : > { %v1184_v53 = vpop.f32.mrf.mxu2 }
 0x2e6   : > { %v1185_v54 = vadd.f32 %v1184_v53, %v951_v26  ;;  %v817_v26 = vld [vmem:[%s4634_s3 + $0x300] sm:$0xff]  ;;  %v981_v28 = vpop.f32.mrf.mxu1 }
 0x2e7   : > { %1025 = vmatmul.f32.gmra.mxu1 %v817_v26  ;;  %v830_v26 = vld [vmem:[%s4634_s3 + $0x368] sm:$0xff] }
 0x2e8   : > { %2829 = vmatmul.msk.f32.gmra.mxu3 %vm1340_vm2, %v1185_v54 }
 0x2ea   : > { %1234 = vmatmul.f32.gmra.mxu2 %v802_v57  ;;  %v827_v57 = vld [vmem:[%s4634_s3 + $0x350] sm:$0xff] }
 0x2ed   : > { %v1187_v60 = vpop.f32.mrf.mxu2 }
 0x2ee   : > { %v1188_v62 = vadd.f32 %v1187_v60, %v954_v32  ;;  %v984_v32 = vpop.f32.mrf.mxu1 }
 0x2ef   : > { %1028 = vmatmul.f32.gmra.mxu1 %v819_v18  ;;  %v837_v18 = vld [vmem:[%s4634_s3 + $0x3a0] sm:$0xff] }
 0x2f0   : > { %2834 = vmatmul.msk.f32.vlgmr.msra.gmra.mxu3 %vm1340_vm2, %v1188_v62 }
 0x2f2   : > { %1237 = vmatmul.f32.gmra.mxu2 %v804_v0  ;;  %v829_v0 = vld [vmem:[%s4634_s3 + $0x360] sm:$0xff] }
 0x2f3   : > { %v3652_v37 = vpop.f32.mrf.mxu3 }
 0x2f5   : > { %v1190_v2 = vpop.f32.mrf.mxu2 }
 0x2f6   : > { %v1191_v3 = vadd.f32 %v1190_v2, %v957_v39  ;;  %v987_v38 = vpop.f32.mrf.mxu1 }
 0x2f7   : > { %1031 = vmatmul.f32.gmra.mxu1 %v821_v35  ;;  %v839_v35 = vld [vmem:[%s4634_s3 + $0x3b0] sm:$0xff] }
 0x2f8   : > { %2835 = vmatmul.msk.f32.gmra.mxu3 %vm1340_vm2, %v1191_v3 }
 0x2fa   : > { %1240 = vmatmul.f32.gmra.mxu2 %v806_v7 }
 0x2fb   : > { %v3661_v43 = vpop.f32.mrf.mxu3 }
 0x2fd   : > { %v1193_v9 = vpop.f32.mrf.mxu2 }
 0x2fe   : > { %v1194_v4 = vadd.f32 %v1193_v9, %v960_v45  ;;  %v990_v45 = vpop.f32.mrf.mxu1  ;;  %v826_v9 = vld [vmem:[%s4634_s3 + $0x348] sm:$0xff] }
 0x2ff   : > { %1034 = vmatmul.f32.gmra.mxu1 %v823_v41 }
 0x300   : > { %2836 = vmatmul.msk.f32.gmra.mxu3 %vm1340_vm2, %v1194_v4  ;;  %v2857_v4 = vld [vmem:[%s4635_s4 + $0xb8] sm:$0xff] }
 0x301   : > { %1657 = vmatpush.msra.mxu0 %v2857_v4 }
 0x302   : > { %1243 = vmatmul.f32.gmra.mxu2 %v808_v59  ;;  %v2856_v59 = vld [vmem:[%s4635_s4 + $0xb0] sm:$0xff] }
 0x303   : > { %v3670_v54 = vpop.f32.mrf.mxu3  ;;  %1658 = vmatpush.msra.mxu0 %v2856_v59 }
 0x305   : > { %v1196_v12 = vpop.f32.mrf.mxu2 }
 0x306   : > { %v1197_v13 = vadd.f32 %v1196_v12, %v963_v52  ;;  %v993_v52 = vpop.f32.mrf.mxu1  ;;  %v2855_v12 = vld [vmem:[%s4635_s4 + $0xa8] sm:$0xff] }
 0x307   : > { %1037 = vmatmul.f32.gmra.mxu1 %v825_v49  ;;  %1659 = vmatpush.msra.mxu0 %v2855_v12 }
 0x308   : > { %2837 = vmatmul.msk.f32.gmra.mxu3 %vm1340_vm2, %v1197_v13 }
 0x30a   : > { %1246 = vmatmul.f32.gmra.mxu2 %v810_v16  ;;  %v2854_v16 = vld [vmem:[%s4635_s4 + $0xa0] sm:$0xff] }
 0x30b   : > { %v3685_v2 = vpop.f32.mrf.mxu3  ;;  %1660 = vmatpush.msra.mxu0 %v2854_v16  ;;  %v844_v16 = vld [vmem:[%s4634_s3 + $0x3d8] sm:$0xff] }
 0x30d   : > { %v1199_v22 = vpop.f32.mrf.mxu2 }
 0x30e   : > { %v1200_v25 = vadd.f32 %v1199_v22, %v966_v58  ;;  %v822_v58 = vld [vmem:[%s4634_s3 + $0x328] sm:$0xff]  ;;  %v996_v60 = vpop.f32.mrf.mxu1 }
 0x30f   : > { %1040 = vmatmul.f32.gmra.mxu1 %v827_v57 }
 0x310   : > { %2838 = vmatmul.msk.f32.gmra.mxu3 %vm1340_vm2, %v1200_v25 }
 0x312   : > { %1249 = vmatmul.f32.gmra.mxu2 %v812_v27 }
 0x313   : > { %v3698_v10 = vpop.f32.mrf.mxu3 }
 0x315   : > { %v1202_v29 = vpop.f32.mrf.mxu2 }
 0x316   : > { %v1203_v30 = vadd.f32 %v1202_v29, %v969_v1  ;;  %v824_v1 = vld [vmem:[%s4634_s3 + $0x338] sm:$0xff]  ;;  %v999_v3 = vpop.f32.mrf.mxu1 }
 0x317   : > { %1043 = vmatmul.f32.gmra.mxu1 %v829_v0 }
 0x318   : > { %2839 = vmatmul.msk.f32.gmra.mxu3 %vm1340_vm2, %v1203_v30 }
 0x31a   : > { %1252 = vmatmul.f32.gmra.mxu2 %v814_v31  ;;  %v832_v31 = vld [vmem:[%s4634_s3 + $0x378] sm:$0xff] }
 0x31d   : > { %v1205_v33 = vpop.f32.mrf.mxu2 }
 0x31e   : > { %v1206_v34 = vadd.f32 %v1205_v33, %v972_v8  ;;  %v831_v8 = vld [vmem:[%s4634_s3 + $0x370] sm:$0xff] }
 0x31f   : > { %1046 = vmatmul.f32.gmra.mxu1 %v831_v8  ;;  %v2869_v8 = vld [vmem:[%s4635_s4 + $0xd8] sm:$0xff] }
 0x320   : > { %2840 = vmatmul.msk.f32.gmra.mxu3 %vm1340_vm2, %v1206_v34 }
 0x321   : > { %1727 = vmatpush.msra.mxu3 %v2869_v8 }
 0x322   : > { %1255 = vmatmul.f32.gmra.mxu2 %v816_v36  ;;  %v834_v36 = vld [vmem:[%s4634_s3 + $0x388] sm:$0xff] }
 0x325   : > { %v1208_v39 = vpop.f32.mrf.mxu2 }
 0x326   : > { %v1209_v40 = vadd.f32 %v1208_v39, %v975_v11  ;;  %v1002_v11 = vpop.f32.mrf.mxu1 }
 0x327   : > { %1049 = vmatmul.f32.gmra.mxu1 %v833_v17 }
 0x328   : > { %2841 = vmatmul.msk.f32.gmra.mxu3 %vm1340_vm2, %v1209_v40 }
 0x32a   : > { %1258 = vmatmul.f32.gmra.mxu2 %v818_v42  ;;  %v841_v42 = vld [vmem:[%s4634_s3 + $0x3c0] sm:$0xff] }
 0x32d   : > { %v1211_v46 = vpop.f32.mrf.mxu2 }
 0x32e   : > { %v1212_v47 = vadd.f32 %v1211_v46, %v978_v23  ;;  %v3716_v23 = vpop.f32.mrf.mxu3  ;;  %v1005_v24 = vpop.f32.mrf.mxu1 }
 0x32f   : > { %1052 = vmatmul.f32.gmra.mxu1 %v835_v20  ;;  %v846_v20 = vld [vmem:[%s4634_s3 + $0x3e8] sm:$0xff] }
 0x330   : > { %2846 = vmatmul.msk.f32.vlgmr.msrb.gmra.mxu3 %vm1340_vm2, %v1212_v47 }
 0x332   : > { %1261 = vmatmul.f32.gmra.mxu2 %v820_v51  ;;  %v843_v51 = vld [vmem:[%s4634_s3 + $0x3d0] sm:$0xff] }
 0x335   : > { %v1214_v53 = vpop.f32.mrf.mxu2 }
 0x336   : > { %v1215_v56 = vadd.f32 %v1214_v53, %v981_v28  ;;  %v1008_v27 = vpop.f32.mrf.mxu1  ;;  %v3725_v29 = vpop.f32.mrf.mxu3  ;;  %v838_v53 = vld [vmem:[%s4634_s3 + $0x3a8] sm:$0xff] }
 0x337   : > { %1055 = vmatmul.f32.gmra.mxu1 %v837_v18 }
 0x338   : > { %2847 = vmatmul.msk.f32.gmra.mxu3 %vm1340_vm2, %v1215_v56 }
 0x33a   : > { %1264 = vmatmul.f32.gmra.mxu2 %v822_v58 }
 0x33d   : > { %v1217_v62 = vpop.f32.mrf.mxu2 }
 0x33e   : > { %v1218_v63 = vadd.f32 %v1217_v62, %v984_v32  ;;  %v1011_v32 = vpop.f32.mrf.mxu1  ;;  %v840_v62 = vld [vmem:[%s4634_s3 + $0x3b8] sm:$0xff] }
 0x33f   : > { %1058 = vmatmul.f32.gmra.mxu1 %v839_v35  ;;  %v853_v35 = vld [vmem:[%s4634_s3 + $0x420] sm:$0xff] }
 0x340   : > { %2848 = vmatmul.msk.f32.gmra.mxu3 %vm1340_vm2, %v1218_v63 }
 0x342   : > { %1267 = vmatmul.f32.gmra.mxu2 %v824_v1 }
 0x345   : > { %v1220_v5 = vpop.f32.mrf.mxu2 }
 0x346   : > { %v1221_v7 = vadd.f32 %v1220_v5, %v987_v38  ;;  %v3740_v38 = vpop.f32.mrf.mxu3  ;;  %v1014_v39 = vpop.f32.mrf.mxu1  ;;  %v847_v5 = vld [vmem:[%s4634_s3 + $0x3f0] sm:$0xff] }
 0x347   : > { %1061 = vmatmul.f32.gmra.mxu1 %v841_v42 }
 0x348   : > { %2849 = vmatmul.msk.f32.gmra.mxu3 %vm1340_vm2, %v1221_v7  ;;  %v842_v7 = vld [vmem:[%s4634_s3 + $0x3c8] sm:$0xff] }
 0x34a   : > { %1270 = vmatmul.f32.gmra.mxu2 %v826_v9  ;;  %v2868_v9 = vld [vmem:[%s4635_s4 + $0xd0] sm:$0xff] }
 0x34b   : > { %1728 = vmatpush.msra.mxu3 %v2868_v9 }
 0x34d   : > { %v1223_v13 = vpop.f32.mrf.mxu2 }
 0x34e   : > { %v1224_v15 = vadd.f32 %v1223_v13, %v990_v45  ;;  %v836_v45 = vld [vmem:[%s4634_s3 + $0x398] sm:$0xff]  ;;  %v1017_v46 = vpop.f32.mrf.mxu1 }
 0x34f   : > { %1064 = vmatmul.f32.gmra.mxu1 %v843_v51 }
 0x350   : > { %2850 = vmatmul.msk.f32.gmra.mxu3 %vm1340_vm2, %v1224_v15  ;;  %v2866_v15 = vld [vmem:[%s4635_s4 + $0xc0] sm:$0xff] }
 0x352   : > { %1273 = vmatmul.f32.gmra.mxu2 %v828_v19 }
 0x355   : > { %v1226_v22 = vpop.f32.mrf.mxu2 }
 0x356   : > { %v1227_v25 = vadd.f32 %v1226_v22, %v993_v52  ;;  %v3753_v52 = vpop.f32.mrf.mxu3  ;;  %v1020_v56 = vpop.f32.mrf.mxu1 }
 0x358   : > { %2851 = vmatmul.msk.f32.gmra.mxu3 %vm1340_vm2, %v1227_v25  ;;  %v849_v25 = vld [vmem:[%s4634_s3 + $0x400] sm:$0xff] }
 0x35a   : > { %1276 = vmatmul.f32.gmra.mxu2 %v830_v26 }
 0x35d   : > { %v1229_v28 = vpop.f32.mrf.mxu2 }
 0x35e   : > { %v1230_v30 = vadd.f32 %v1229_v28, %v996_v60  ;;  %v845_v60 = vld [vmem:[%s4634_s3 + $0x3e0] sm:$0xff]  ;;  %v3766_v63 = vpop.f32.mrf.mxu3  ;;  %v1023_v0 = vpop.f32.mrf.mxu1 }
 0x35f   : > { %1067 = vmatmul.f32.gmra.mxu1 %v845_v60 }
 0x360   : > { %2852 = vmatmul.msk.f32.gmra.mxu3 %vm1340_vm2, %v1230_v30  ;;  %v851_v30 = vld [vmem:[%s4634_s3 + $0x410] sm:$0xff] }
 0x362   : > { %1279 = vmatmul.f32.gmra.mxu2 %v832_v31  ;;  %v848_v31 = vld [vmem:[%s4634_s3 + $0x3f8] sm:$0xff] }
 0x365   : > { %v1232_v33 = vpop.f32.mrf.mxu2 }
 0x366   : > { %v1233_v34 = vadd.f32 %v1232_v33, %v999_v3  ;;  %v3781_v4 = vpop.f32.mrf.mxu3  ;;  %v1026_v59 = vpop.f32.mrf.mxu1 }
 0x367   : > { %1070 = vmatmul.f32.gmra.mxu1 %v847_v5  ;;  %v2881_v5 = vld [vmem:[%s4635_s4 + $0xf8] sm:$0xff] }
 0x368   : > { %2853 = vmatmul.msk.f32.gmra.mxu3 %vm1340_vm2, %v1233_v34  ;;  %1797 = vmatpush.msrb.mxu0 %v2881_v5 }
 0x36a   : > { %1282 = vmatmul.f32.gmra.mxu2 %v834_v36  ;;  %v850_v36 = vld [vmem:[%s4634_s3 + $0x408] sm:$0xff] }
 0x36d   : > { %v1235_v40 = vpop.f32.mrf.mxu2 }
 0x36e   : > { %v1236_v41 = vadd.f32 %v1235_v40, %v1002_v11  ;;  %v2867_v11 = vld [vmem:[%s4635_s4 + $0xc8] sm:$0xff]  ;;  %v1029_v17 = vpop.f32.mrf.mxu1  ;;  %v3793_v19 = vpop.f32.mrf.mxu3 }
 0x36f   : > { %1729 = vmatpush.msra.mxu3 %v2867_v11  ;;  %1073 = vmatmul.f32.gmra.mxu1 %v849_v25  ;;  %v860_v25 = vld [vmem:[%s4634_s3 + $0x458] sm:$0xff] }
 0x370   : > { %2858 = vmatmul.msk.f32.vlgmr.msra.gmra.mxu0 %vm1340_vm2, %v1236_v41 }
 0x371   : > { %1730 = vmatpush.msra.mxu3 %v2866_v15  ;;  %v2879_v15 = vld [vmem:[%s4635_s4 + $0xe8] sm:$0xff] }
 0x372   : > { %1285 = vmatmul.f32.gmra.mxu2 %v836_v45  ;;  %v855_v45 = vld [vmem:[%s4634_s3 + $0x430] sm:$0xff] }
 0x375   : > { %v1238_v47 = vpop.f32.mrf.mxu2 }
 0x376   : > { %v1239_v49 = vadd.f32 %v1238_v47, %v1005_v24  ;;  %v1032_v26 = vpop.f32.mrf.mxu1  ;;  %v3805_v18 = vpop.f32.mrf.mxu3 }
 0x377   : > { %1076 = vmatmul.f32.gmra.mxu1 %v851_v30  ;;  %v862_v30 = vld [vmem:[%s4634_s3 + $0x468] sm:$0xff] }
 0x378   : > { %2859 = vmatmul.msk.f32.gmra.mxu0 %vm1340_vm2, %v1239_v49 }
 0x37a   : > { %1288 = vmatmul.f32.gmra.mxu2 %v838_v53 }
 0x37d   : > { %v1241_v57 = vpop.f32.mrf.mxu2 }
 0x37e   : > { %v1242_v58 = vadd.f32 %v1241_v57, %v1008_v27  ;;  %v854_v57 = vld [vmem:[%s4634_s3 + $0x428] sm:$0xff] }
 0x37f   : > { %1079 = vmatmul.f32.gmra.mxu1 %v853_v35  ;;  %v864_v35 = vld [vmem:[%s4634_s3 + $0x478] sm:$0xff] }
 0x380   : > { %2860 = vmatmul.msk.f32.gmra.mxu0 %vm1340_vm2, %v1242_v58 }
 0x382   : > { %1291 = vmatmul.f32.gmra.mxu2 %v840_v62 }
 0x385   : > { %v1244_v1 = vpop.f32.mrf.mxu2 }
 0x386   : > { %v1245_v3 = vadd.f32 %v1244_v1, %v1011_v32  ;;  %v1035_v32 = vpop.f32.mrf.mxu1  ;;  %v859_v1 = vld [vmem:[%s4634_s3 + $0x450] sm:$0xff] }
 0x387   : > { %1082 = vmatmul.f32.gmra.mxu1 %v855_v45 }
 0x388   : > { %2861 = vmatmul.msk.f32.gmra.mxu0 %vm1340_vm2, %v1245_v3  ;;  %v856_v3 = vld [vmem:[%s4634_s3 + $0x438] sm:$0xff] }
 0x38a   : > { %1294 = vmatmul.f32.gmra.mxu2 %v842_v7 }
 0x38d   : > { %v1247_v12 = vpop.f32.mrf.mxu2 }
 0x38e   : > { %v1248_v13 = vadd.f32 %v1247_v12, %v1014_v39  ;;  %v3818_v39 = vpop.f32.mrf.mxu3  ;;  %v1038_v40 = vpop.f32.mrf.mxu1  ;;  %v858_v12 = vld [vmem:[%s4634_s3 + $0x448] sm:$0xff] }
 0x390   : > { %2862 = vmatmul.msk.f32.gmra.mxu0 %vm1340_vm2, %v1248_v13  ;;  %v2880_v13 = vld [vmem:[%s4635_s4 + $0xf0] sm:$0xff] }
 0x391   : > { %1798 = vmatpush.msrb.mxu0 %v2880_v13  ;;  %v1331_v13 = vld [vmem:[%s4635_s4] sm:$0xff] }
 0x392   : > { %1297 = vmatmul.f32.gmra.mxu2 %v844_v16 }
 0x393   : > { %1799 = vmatpush.msrb.mxu0 %v2879_v15 }
 0x395   : > { %v1250_v24 = vpop.f32.mrf.mxu2 }
 0x396   : > { %v1251_v22 = vadd.f32 %v1250_v24, %v1017_v46  ;;  %v852_v46 = vld [vmem:[%s4634_s3 + $0x418] sm:$0xff]  ;;  %v3827_v47 = vpop.f32.mrf.mxu3  ;;  %v1041_v49 = vpop.f32.mrf.mxu1  ;;  %v2878_v24 = vld [vmem:[%s4635_s4 + $0xe0] sm:$0xff] }
 0x397   : > { %1800 = vmatpush.msrb.mxu0 %v2878_v24 }
 0x398   : > { %2863 = vmatmul.msk.f32.gmra.mxu0 %vm1340_vm2, %v1251_v22  ;;  %v863_v22 = vld [vmem:[%s4634_s3 + $0x470] sm:$0xff] }
 0x39a   : > { %1300 = vmatmul.f32.gmra.mxu2 %v846_v20 }
 0x39d   : > { %v1253_v27 = vpop.f32.mrf.mxu2 }
 0x39e   : > { %v1254_v28 = vadd.f32 %v1253_v27, %v1020_v56  ;;  %v857_v56 = vld [vmem:[%s4634_s3 + $0x440] sm:$0xff]  ;;  %v1044_v58 = vpop.f32.mrf.mxu1  ;;  %v3836_v60 = vpop.f32.mrf.mxu3 }
 0x39f   : > { %1085 = vmatmul.f32.gmra.mxu1 %v857_v56 }
 0x3a0   : > { %2864 = vmatmul.msk.f32.gmra.mxu0 %vm1340_vm2, %v1254_v28 }
 0x3a2   : > { %1303 = vmatmul.f32.gmra.mxu2 %v848_v31 }
 0x3a5   : > { %v1256_v33 = vpop.f32.mrf.mxu2 }
 0x3a6   : > { %v1257_v34 = vadd.f32 %v1256_v33, %v1023_v0  ;;  %v1047_v8 = vpop.f32.mrf.mxu1  ;;  %v3851_v11 = vpop.f32.mrf.mxu3 }
 0x3a7   : > { %1088 = vmatmul.f32.gmra.mxu1 %v859_v1  ;;  %v1334_v1 = vld [vmem:[%s4635_s4 + $0x18] sm:$0xff] }
 0x3a8   : > { %2865 = vmatmul.msk.f32.gmra.mxu0 %vm1340_vm2, %v1257_v34 }
 0x3a9   : > { %1933 = vmatpush.msra.mxu0 %v1334_v1 }
 0x3aa   : > { %1306 = vmatmul.f32.gmra.mxu2 %v850_v36 }
 0x3ad   : > { %v1259_v41 = vpop.f32.mrf.mxu2 }
 0x3ae   : > { %v1260_v42 = vadd.f32 %v1259_v41, %v1026_v59  ;;  %v861_v59 = vld [vmem:[%s4634_s3 + $0x460] sm:$0xff]  ;;  %v1050_v20 = vpop.f32.mrf.mxu1 }
 0x3af   : > { %1091 = vmatmul.f32.gmra.mxu1 %v861_v59  ;;  %v1333_v59 = vld [vmem:[%s4635_s4 + $0x10] sm:$0xff] }
 0x3b0   : > { %2870 = vmatmul.msk.f32.vlgmr.msra.gmra.mxu3 %vm1340_vm2, %v1260_v42  ;;  %1934 = vmatpush.msra.mxu0 %v1333_v59 }
 0x3b2   : > { %1309 = vmatmul.f32.gmra.mxu2 %v852_v46 }
 0x3b5   : > { %v1262_v51 = vpop.f32.mrf.mxu2 }
 0x3b6   : > { %v1263_v53 = vadd.f32 %v1262_v51, %v1029_v17  ;;  %v1053_v31 = vpop.f32.mrf.mxu1 }
 0x3b7   : > { %1094 = vmatmul.f32.gmra.mxu1 %v863_v22  ;;  %v2892_v22 = vld [vmem:[%s4635_s4 + $0x110] sm:$0xff] }
 0x3b8   : > { %2871 = vmatmul.msk.f32.gmra.mxu3 %vm1340_vm2, %v1263_v53 }
 0x3ba   : > { %1312 = vmatmul.f32.gmra.mxu2 %v854_v57 }
 0x3bd   : > { %v1265_v62 = vpop.f32.mrf.mxu2 }
 0x3be   : > { %v1266_v0 = vadd.f32 %v1265_v62, %v1032_v26  ;;  %v3873_v26 = vpop.f32.mrf.mxu3  ;;  %v1056_v36 = vpop.f32.mrf.mxu1 }
 0x3c0   : > { %2872 = vmatmul.msk.f32.gmra.mxu3 %vm1340_vm2, %v1266_v0 }
 0x3c2   : > { %1315 = vmatmul.f32.gmra.mxu2 %v856_v3 }
 0x3c5   : > { %v1268_v7 = vpop.f32.mrf.mxu2 }
 0x3c6   : > { %v1269_v9 = vadd.f32 %v1268_v7, %v1035_v32  ;;  %v3879_v32 = vpop.f32.mrf.mxu3  ;;  %v1059_v46 = vpop.f32.mrf.mxu1 }
 0x3c8   : > { %2873 = vmatmul.msk.f32.gmra.mxu3 %vm1340_vm2, %v1269_v9  ;;  %v2893_v9 = vld [vmem:[%s4635_s4 + $0x118] sm:$0xff] }
 0x3c9   : > { %1867 = vmatpush.msrb.mxu3 %v2893_v9 }
 0x3ca   : > { %1318 = vmatmul.f32.gmra.mxu2 %v858_v12  ;;  %v1332_v12 = vld [vmem:[%s4635_s4 + $0x8] sm:$0xff] }
 0x3cb   : > { %1935 = vmatpush.msra.mxu0 %v1332_v12  ;;  %1868 = vmatpush.msrb.mxu3 %v2892_v22 }
 0x3cd   : > { %v1271_v16 = vpop.f32.mrf.mxu2  ;;  %1936 = vmatpush.msra.mxu0 %v1331_v13 }
 0x3ce   : > { %v1272_v17 = vadd.f32 %v1271_v16, %v1038_v40  ;;  %v3885_v40 = vpop.f32.mrf.mxu3  ;;  %v1062_v57 = vpop.f32.mrf.mxu1 }
 0x3d0   : > { %2874 = vmatmul.msk.f32.gmra.mxu3 %vm1340_vm2, %v1272_v17 }
 0x3d2   : > { %1321 = vmatmul.f32.gmra.mxu2 %v860_v25  ;;  %v2891_v25 = vld [vmem:[%s4635_s4 + $0x108] sm:$0xff] }
 0x3d3   : > { %1869 = vmatpush.msrb.mxu3 %v2891_v25 }
 0x3d5   : > { %v1274_v27 = vpop.f32.mrf.mxu2 }
 0x3d6   : > { %v1275_v28 = vadd.f32 %v1274_v27, %v1041_v49  ;;  %v3888_v51 = vpop.f32.mrf.mxu3  ;;  %v1065_v3 = vpop.f32.mrf.mxu1 }
 0x3d8   : > { %2875 = vmatmul.msk.f32.gmra.mxu3 %vm1340_vm2, %v1275_v28 }
 0x3da   : > { %1324 = vmatmul.f32.gmra.mxu2 %v862_v30  ;;  %v882_v30 = vpop.f32.mrf.mxu0 }
 0x3dd   : > { %v1277_v33 = vpop.f32.mrf.mxu2 }
 0x3de   : > { %v1278_v34 = vadd.f32 %v1277_v33, %v1044_v58  ;;  %v3892_v58 = vpop.f32.mrf.mxu3  ;;  %v1068_v15 = vpop.f32.mrf.mxu1 }
 0x3e0   : > { %2876 = vmatmul.msk.f32.gmra.mxu3 %vm1340_vm2, %v1278_v34 }
 0x3e2   : > { %1327 = vmatmul.f32.gmra.mxu2 %v864_v35 }
 0x3e5   : > { %v1280_v41 = vpop.f32.mrf.mxu2 }
 0x3e6   : > { %v1281_v42 = vadd.f32 %v1280_v41, %v1047_v8  ;;  %v3898_v5 = vpop.f32.mrf.mxu3  ;;  %v1071_v28 = vpop.f32.mrf.mxu1 }
 0x3e8   : > { %2877 = vmatmul.msk.f32.gmra.mxu3 %vm1340_vm2, %v1281_v42 }
 0x3ed   : > { %v1283_v45 = vpop.f32.mrf.mxu2 }
 0x3ee   : > { %v1284_v49 = vadd.f32 %v1283_v45, %v1050_v20  ;;  %v3913_v16 = vpop.f32.mrf.mxu3  ;;  %v2890_v20 = vld [vmem:[%s4635_s4 + $0x100] sm:$0xff]  ;;  %v1074_v35 = vpop.f32.mrf.mxu1 }
 0x3ef   : > { %1870 = vmatpush.msrb.mxu3 %v2890_v20 }
 0x3f0   : > { %2882 = vmatmul.msk.f32.vlgmr.msrb.gmra.mxu0 %vm1340_vm2, %v1284_v49 }
 0x3f5   : > { %v1286_v53 = vpop.f32.mrf.mxu2 }
 0x3f6   : > { %v1287_v56 = vadd.f32 %v1286_v53, %v1053_v31  ;;  %v3925_v33 = vpop.f32.mrf.mxu3  ;;  %v1077_v49 = vpop.f32.mrf.mxu1 }
 0x3f8   : > { %2883 = vmatmul.msk.f32.gmra.mxu0 %vm1340_vm2, %v1287_v56 }
 0x3fd   : > { %v1289_v62 = vpop.f32.mrf.mxu2 }
 0x3fe   : > { %v1290_v0 = vadd.f32 %v1289_v62, %v1056_v36  ;;  %v3928_v36 = vpop.f32.mrf.mxu0  ;;  %v3931_v42 = vpop.f32.mrf.mxu3  ;;  %v1116_v62 = vadd.f32 %v3379_v44, %v882_v30 }
 0x3ff   : > { %v1080_v1 = vpop.f32.mrf.mxu1 }
 0x400   : > { %2884 = vmatmul.msk.f32.gmra.mxu0 %vm1340_vm2, %v1290_v0 }
 0x405   : > { %v1292_v7 = vpop.f32.mrf.mxu2 }
 0x406   : > { %v1293_v8 = vadd.f32 %v1292_v7, %v1059_v46  ;;  %v3933_v53 = vpop.f32.mrf.mxu0  ;;  %v3936_v56 = vpop.f32.mrf.mxu3 }
 0x407   : > { %v1083_v59 = vpop.f32.mrf.mxu1 }
 0x408   : > { %2885 = vmatmul.msk.f32.gmra.mxu0 %vm1340_vm2, %v1293_v8 }
 0x40d   : > { %v1295_v17 = vpop.f32.mrf.mxu2 }
 0x40e   : > { %v1296_v24 = vadd.f32 %v1295_v17, %v1062_v57  ;;  %v3943_v7 = vpop.f32.mrf.mxu3 }
 0x410   : > { %2886 = vmatmul.msk.f32.gmra.mxu0 %vm1340_vm2, %v1296_v24 }
 0x415   : > { %v1298_v27 = vpop.f32.mrf.mxu2 }
 0x416   : > { %v1299_v31 = vadd.f32 %v1298_v27, %v1065_v3  ;;  %v3941_v3 = vpop.f32.mrf.mxu0 }
 0x418   : > { %2887 = vmatmul.msk.f32.gmra.mxu0 %vm1340_vm2, %v1299_v31 }
 0x41c   : > { %v1086_v24 = vpop.f32.mrf.mxu1 }
 0x41d   : > { %v1301_v34 = vpop.f32.mrf.mxu2 }
 0x41e   : > { %v1302_v41 = vadd.f32 %v1301_v34, %v1068_v15  ;;  %v3948_v12 = vpop.f32.mrf.mxu0  ;;  %v3950_v15 = vpop.f32.mrf.mxu3 }
 0x420   : > { %2888 = vmatmul.msk.f32.gmra.mxu0 %vm1340_vm2, %v1302_v41 }
 0x425   : > { %v1304_v45 = vpop.f32.mrf.mxu2 }
 0x426   : > { %v1305_v46 = vadd.f32 %v1304_v45, %v1071_v28  ;;  %v3955_v22 = vpop.f32.mrf.mxu0  ;;  %v1089_v28 = vpop.f32.mrf.mxu1 }
 0x428   : > { %2889 = vmatmul.msk.f32.gmra.mxu0 %vm1340_vm2, %v1305_v46 }
 0x42d   : > { %v1307_v57 = vpop.f32.mrf.mxu2 }
 0x42e   : > { %v1308_v0 = vadd.f32 %v1307_v57, %v1074_v35  ;;  %v3962_v30 = vpop.f32.mrf.mxu0 }
 0x430   : > { %2902 = vmatmul.msk.f32.vlgmr.msra.gmra.mxu0 %vm1340_vm2, %v1116_v62  ;;  %2894 = vmatmul.msk.f32.vlgmr.msrb.gmra.mxu3 %vm1340_vm2, %v1308_v0 }
 0x435   : > { %v1310_v8 = vpop.f32.mrf.mxu2 }
 0x436   : > { %v1311_v9 = vadd.f32 %v1310_v8, %v1077_v49  ;;  %v3972_v35 = vpop.f32.mrf.mxu0 }
 0x438   : > { %2903 = vmatmul.msk.f32.gmra.mxu0 %vm1340_vm2, %v3387_v50  ;;  %2895 = vmatmul.msk.f32.gmra.mxu3 %vm1340_vm2, %v1311_v9  ;;  %v3960_v50 = vpop.f32.mrf.mxu3 }
 0x43d   : > { %v1313_v44 = vpop.f32.mrf.mxu2 }
 0x43e   : > { %v1314_v13 = vadd.f32 %v1313_v44, %v1080_v1  ;;  %v3979_v49 = vpop.f32.mrf.mxu0 }
 0x440   : > { %2904 = vmatmul.msk.f32.gmra.mxu0 %vm1340_vm2, %v3395_v55  ;;  %2896 = vmatmul.msk.f32.gmra.mxu3 %vm1340_vm2, %v1314_v13  ;;  %v3967_v55 = vpop.f32.mrf.mxu3 }
 0x445   : > { %v1316_v17 = vpop.f32.mrf.mxu2 }
 0x446   : > { %v1317_v25 = vadd.f32 %v1316_v17, %v1083_v59 }
 0x448   : > { %2905 = vmatmul.msk.f32.gmra.mxu0 %vm1340_vm2, %v3403_v61  ;;  %2897 = vmatmul.msk.f32.gmra.mxu3 %vm1340_vm2, %v1317_v25  ;;  %v1092_v61 = vpop.f32.mrf.mxu1  ;;  %v3974_v41 = vpop.f32.mrf.mxu3 }
 0x44d   : > { %v1319_v20 = vpop.f32.mrf.mxu2 }
 0x44e   : > { %v1320_v27 = vadd.f32 %v1319_v20, %v1086_v24 }
 0x450   : > { %2906 = vmatmul.msk.f32.gmra.mxu0 %vm1340_vm2, %v3420_v6  ;;  %2898 = vmatmul.msk.f32.gmra.mxu3 %vm1340_vm2, %v1320_v27  ;;  %v1095_v6 = vpop.f32.mrf.mxu1  ;;  %v3981_v57 = vpop.f32.mrf.mxu3 }
 0x451   : > { %4645 = vst [vmem:[#allocation2_spill] sm:$0xff] %v3981_v57 }
 0x455   : > { %v1322_v31 = vpop.f32.mrf.mxu2 }
 0x456   : > { %v1323_v34 = vadd.f32 %v1322_v31, %v1089_v28 }
 0x458   : > { %2907 = vmatmul.msk.f32.gmra.mxu0 %vm1340_vm2, %v3431_v48  ;;  %2899 = vmatmul.msk.f32.gmra.mxu3 %vm1340_vm2, %v1323_v34  ;;  %v3988_v1 = vpop.f32.mrf.mxu3 }
 0x459   : > { %4647 = vst [vmem:[#allocation4_spill] sm:$0xff] %v3988_v1 }
 0x45d   : > { %v1325_v45 = vpop.f32.mrf.mxu2 }
 0x45e   : > { %v1326_v46 = vadd.f32 %v1325_v45, %v1092_v61 }
 0x460   : > { %2908 = vmatmul.msk.f32.gmra.mxu0 %vm1340_vm2, %v3439_v14  ;;  %2900 = vmatmul.msk.f32.gmra.mxu3 %vm1340_vm2, %v1326_v46  ;;  %v3992_v14 = vpop.f32.mrf.mxu3 }
 0x461   : > { %4649 = vst [vmem:[#allocation6_spill] sm:$0xff] %v3992_v14 }
 0x465   : > { %v1328_v48 = vpop.f32.mrf.mxu2 }
 0x466   : > { %v1329_v62 = vadd.f32 %v1328_v48, %v1095_v6 }
 0x468   : > { %2909 = vmatmul.msk.f32.gmra.mxu0 %vm1340_vm2, %v3447_v21  ;;  %2901 = vmatmul.msk.f32.gmra.mxu3 %vm1340_vm2, %v1329_v62  ;;  %v3996_v59 = vpop.f32.mrf.mxu3 }
 0x46d   : > { %v3986_v0 = vpop.f32.mrf.mxu0 }
 0x46e   : > { %4646 = vst [vmem:[#allocation3_spill] sm:$0xff] %v3986_v0 }
 0x470   : > { %v1744_v13 = vpop.f32.mrf.mxu3 }
 0x475   : > { %v3990_v8 = vpop.f32.mrf.mxu0 }
 0x476   : > { %4648 = vst [vmem:[#allocation5_spill] sm:$0xff] %v3990_v8 }
 0x478   : > { %v1747_v24 = vpop.f32.mrf.mxu3 }
 0x47d   : > { %v3994_v9 = vpop.f32.mrf.mxu0 }
 0x47e   : > { %4650 = vst [vmem:[#allocation7_spill] sm:$0xff] %v3994_v9 }
 0x480   : > { %v1750_v20 = vpop.f32.mrf.mxu3 }
 0x485   : > { %v3998_v44 = vpop.f32.mrf.mxu0 }
 0x486   : > { %4651 = vst [vmem:[#allocation8_spill] sm:$0xff] %v3998_v44 }
 0x488   : > { %v1753_v28 = vpop.f32.mrf.mxu3 }
 0x48d   : > { %v4000_v17 = vpop.f32.mrf.mxu0 }
 0x48e   : > { %4652 = vst [vmem:[#allocation9_spill] sm:$0xff] %v4000_v17 }
 0x495   : > { %v4002_v21 = vpop.f32.mrf.mxu0 }
 0x49d   : > { %v1820_v25 = vpop.f32.mrf.mxu0 }
 0x4a5   : > { %v4004_v27 = vpop.f32.mrf.mxu0 }
 0x4a6   : > { %4653 = vst [vmem:[#allocation10_spill] sm:$0xff] %v4004_v27 }
 0x4ad   : > { %v1938_v31 = vpop.f32.mrf.mxu0 }
 0x4b3   : > { %v4006_v34 = vpop.f32.mrf.mxu3 }
 0x4b4   : > { %4654 = vst [vmem:[#allocation11_spill] sm:$0xff] %v4006_v34 }
 0x4b5   : > { %v1941_v61 = vpop.f32.mrf.mxu0 }
 0x4b6   : > { %v1942_v14 = vadd.f32 %v1941_v61, %v3661_v43 }
 0x4bb   : > { %v4008_v45 = vpop.f32.mrf.mxu3 }
 0x4bc   : > { %4655 = vst [vmem:[#allocation12_spill] sm:$0xff] %v4008_v45 }
 0x4bd   : > { %v1944_v46 = vpop.f32.mrf.mxu0 }
 0x4be   : > { %v1945_v17 = vadd.f32 %v1944_v46, %v3670_v54 }
 0x4c3   : > { %v4010_v6 = vpop.f32.mrf.mxu3 }
 0x4c4   : > { %4656 = vst [vmem:[#allocation13_spill] sm:$0xff] %v4010_v6 }
 0x4c5   : > { %v1947_v48 = vpop.f32.mrf.mxu0 }
 0x4c6   : > { %v1948_v1 = vadd.f32 %v1947_v48, %v3685_v2  ;;  %v1939_v2 = vadd.f32 %v1938_v31, %v3652_v37  ;;  %v4664_v31 = vld [vmem:[#allocation2_spill] sm:$0xff] }
 0x4cb   : > { %v4012_v62 = vpop.f32.mrf.mxu3 }
 0x4cc   : > { %4657 = vst [vmem:[#allocation14_spill] sm:$0xff] %v4012_v62 }
 0x4cd   : > { %v1950_v0 = vpop.f32.mrf.mxu0 }
 0x4ce   : > { %v1951_v44 = vadd.f32 %v1950_v0, %v3698_v10 }
 0x4d0   : > { %v1966_v6 = vadd.f32 %v1951_v44, %v3805_v18  ;;  %v1963_v18 = vadd.f32 %v1942_v14, %v3766_v63 }
 0x4d2   : > { %v1971_v63 = vadd.f32 %v1963_v18, %v3873_v26  ;;  %v4669_v18 = vld [vmem:[#allocation3_spill] sm:$0xff] }
 0x4d3   : > { %v4014_v8 = vpop.f32.mrf.mxu3 }
 0x4d4   : > { %4658 = vst [vmem:[#allocation15_spill] sm:$0xff] %v4014_v8  ;;  %v1965_v8 = vadd.f32 %v1948_v1, %v3793_v19 }
 0x4d5   : > { %v1953_v9 = vpop.f32.mrf.mxu0 }
 0x4d6   : > { %v1954_v57 = vadd.f32 %v1953_v9, %v3716_v23 }
 0x4d8   : > { %v1967_v34 = vadd.f32 %v1954_v57, %v3818_v39  ;;  %v1964_v39 = vadd.f32 %v1945_v17, %v3781_v4  ;;  %v1974_v57 = vadd.f32 %v1966_v6, %v3888_v51  ;;  %v4659_v17 = vld [vmem:[#allocation6_spill] sm:$0xff] }
 0x4da   : > { %v1975_v23 = vadd.f32 %v1967_v34, %v3892_v58  ;;  %v1962_v58 = vadd.f32 %v1939_v2, %v3753_v52  ;;  %v1982_v37 = vadd.f32 %v1974_v57, %v3950_v15  ;;  %v4665_v34 = vld [vmem:[#allocation7_spill] sm:$0xff]  ;;  %v4668_v2 = vld [vmem:[#allocation14_spill] sm:$0xff] }
 0x4db   : > { %v1887_v45 = vpop.f32.mrf.mxu3  ;;  %v4666_v46 = vld [vmem:[#allocation15_spill] sm:$0xff] }
 0x4dc   : > { %v1983_v43 = vadd.f32 %v1975_v23, %v3960_v50  ;;  %v1970_v52 = vadd.f32 %v1962_v58, %v3851_v11  ;;  %v4667_v23 = vld [vmem:[#allocation5_spill] sm:$0xff] }
 0x4dd   : > { %v1956_v27 = vpop.f32.mrf.mxu0 }
 0x4de   : > { %v1957_v62 = vadd.f32 %v1956_v27, %v3725_v29  ;;  %v1973_v29 = vadd.f32 %v1965_v8, %v3885_v40  ;;  %v1991_v50 = vadd.f32 %v1983_v43, %v3962_v30  ;;  %v1978_v30 = vadd.f32 %v1970_v52, %v3925_v33  ;;  %v4670_v43 = vld [vmem:[#allocation13_spill] sm:$0xff] }
 0x4e0   : > { %v1968_v10 = vadd.f32 %v1957_v62, %v3827_v47  ;;  %v1972_v47 = vadd.f32 %v1964_v39, %v3879_v32  ;;  %v1981_v40 = vadd.f32 %v1973_v29, %v3943_v7  ;;  %v1990_v32 = vadd.f32 %v1982_v37, %v3955_v22 }
 0x4e1   : > { %v1999_v26 = vadd.f32 %v1991_v50, %v1747_v24  ;;  %v4660_v24 = vld [vmem:[#allocation9_spill] sm:$0xff] }
 0x4e2   : > { %v1976_v54 = vadd.f32 %v1968_v10, %v3898_v5  ;;  %v1980_v1 = vadd.f32 %v1972_v47, %v3936_v56  ;;  %v1989_v8 = vadd.f32 %v1981_v40, %v3948_v12  ;;  %v1998_v14 = vadd.f32 %v1990_v32, %v1744_v13 }
 0x4e3   : > { %v1890_v5 = vpop.f32.mrf.mxu3  ;;  %v2007_v9 = vadd.f32 %v1999_v26, %v4002_v21  ;;  %v1986_v12 = vadd.f32 %v1978_v30, %v3928_v36  ;;  %v2039_v26 = vld [vmem:[%s4637_s6 + $0x10] sm:$0xff]  ;;  %v2040_v30 = vld [vmem:[%s4637_s6 + $0x18] sm:$0xff] }
 0x4e4   : > { %v1984_v19 = vadd.f32 %v1976_v54, %v3967_v55  ;;  %v2006_v33 = vadd.f32 %v1998_v14, %v4660_v24  ;;  %v2042_v14 = vld [vmem:[%s4637_s6 + $0x28] sm:$0xff]  ;;  %v2049_v24 = vld [vmem:[%s4637_s6 + $0x60] sm:$0xff] }
 0x4e5   : > { %v1959_v0 = vpop.f32.mrf.mxu0  ;;  %v2015_v21 = vadd.f32 %v2007_v9, %v1887_v45  ;;  %v1994_v36 = vadd.f32 %v1986_v12, %v4664_v31  ;;  %v2045_v9 = vld [vmem:[%s4637_s6 + $0x40] sm:$0xff]  ;;  %v2047_v12 = vld [vmem:[%s4637_s6 + $0x50] sm:$0xff] }
 0x4e6   : > { %v1960_v4 = vadd.f32 %v1959_v0, %v3740_v38  ;;  %v1992_v51 = vadd.f32 %v1984_v19, %v3972_v35  ;;  %v1979_v35 = vadd.f32 %v1971_v63, %v3931_v42  ;;  %v2014_v6 = vadd.f32 %v2006_v33, %v4666_v46  ;;  %v4671_v0 = vld [vmem:[#allocation12_spill] sm:$0xff]  ;;  %v2935_v33 = vld [vmem:[%s4638_s7 + $0x78] sm:$0xff]  ;;  %v2672_v31 = vld [vmem:[%s4642_s11 + $0xe0] sm:$0xff] }
 0x4e7   : > { %v2002_v29 = vadd.f32 %v1994_v36, %v4669_v18  ;;  %2212 = vmatpush.msrb.mxu0 %v2935_v33  ;;  %v2945_v36 = vld [vmem:[%s4638_s7 + $0xb8] sm:$0xff]  ;;  %v2943_v46 = vld [vmem:[%s4638_s7 + $0xa8] sm:$0xff]  ;;  %v2654_v33 = vld [vmem:[%s4642_s11 + $0x50] sm:$0xff] }
 0x4e8   : > { %v1969_v55 = vadd.f32 %v1960_v4, %v3836_v60  ;;  %v2000_v38 = vadd.f32 %v1992_v51, %v1750_v20  ;;  %v1988_v60 = vadd.f32 %v1980_v1, %v3941_v3  ;;  %v1987_v22 = vadd.f32 %v1979_v35, %v3933_v53  ;;  %v4661_v3 = vld [vmem:[#allocation10_spill] sm:$0xff]  ;;  %v4662_v53 = vld [vmem:[#allocation4_spill] sm:$0xff]  ;;  %v4672_v51 = vld [vmem:[#allocation11_spill] sm:$0xff] }
 0x4e9   : > { %v2038_v35 = vld [vmem:[%s4637_s6 + $0x8] sm:$0xff] }
 0x4ea   : > { %v1977_v15 = vadd.f32 %v1969_v55, %v3913_v16  ;;  %v2008_v11 = vadd.f32 %v2000_v38, %v1820_v25  ;;  %v1997_v16 = vadd.f32 %v1989_v8, %v3996_v59  ;;  %v1995_v25 = vadd.f32 %v1987_v22, %v4662_v53  ;;  %v4663_v59 = vld [vmem:[#allocation8_spill] sm:$0xff]  ;;  %v2037_v38 = vld [vmem:[%s4637_s6] sm:$0xff]  ;;  %v2675_v8 = vld [vmem:[%s4642_s11 + $0xf8] sm:$0xff] }
 0x4eb   : > { %v1893_v44 = vpop.f32.mrf.mxu3  ;;  %2697 = vmatpush.msrb.mxu2 %v2675_v8  ;;  %v2044_v22 = vld [vmem:[%s4637_s6 + $0x38] sm:$0xff]  ;;  %v2054_v18 = vld [vmem:[%s4637_s6 + $0x88] sm:$0xff]  ;;  %v2992_v8 = vld [vmem:[%s4638_s7 + $0x1e0] sm:$0xff] }
 0x4ec   : > { %v1985_v7 = vadd.f32 %v1977_v15, %v3974_v41  ;;  %v1996_v41 = vadd.f32 %v1988_v60, %v4659_v17  ;;  %v2016_v20 = vadd.f32 %v2008_v11, %v1890_v5  ;;  %v2005_v27 = vadd.f32 %v1997_v16, %v4663_v59  ;;  %v2041_v60 = vld [vmem:[%s4637_s6 + $0x20] sm:$0xff]  ;;  %v2674_v11 = vld [vmem:[%s4642_s11 + $0xf0] sm:$0xff]  ;;  %v2048_v17 = vld [vmem:[%s4637_s6 + $0x58] sm:$0xff] }
 0x4ed   : > { %v2003_v10 = vadd.f32 %v1995_v25, %v4667_v23  ;;  %v2010_v5 = vadd.f32 %v2002_v29, %v4672_v51  ;;  %2698 = vmatpush.msrb.mxu2 %v2674_v11  ;;  %v2658_v16 = vld [vmem:[%s4642_s11 + $0x70] sm:$0xff]  ;;  %v2931_v53 = vld [vmem:[%s4638_s7 + $0x58] sm:$0xff]  ;;  %v2053_v23 = vld [vmem:[%s4637_s6 + $0x80] sm:$0xff] }
 0x4ee   : > { %v1993_v56 = vadd.f32 %v1985_v7, %v3979_v49  ;;  %v3038_v49 = vld [vmem:[%s4636_s5] ss:$0 sm:$0xff]  ;;  %v2004_v61 = vadd.f32 %v1996_v41, %v4665_v34  ;;  %v2013_v39 = vadd.f32 %v2005_v27, %v4668_v2  ;;  %v2659_v7 = vld [vmem:[%s4642_s11 + $0x78] sm:$0xff]  ;;  %v2657_v41 = vld [vmem:[%s4642_s11 + $0x68] sm:$0xff] }
 0x4ef   : > { %v2027_v48 = vadd.f32 %v3038_v49, %v2016_v20  ;;  %v2026_v57 = vadd.f32 %v3038_v49, %v2015_v21  ;;  %v2025_v45 = vadd.f32 %v3038_v49, %v2014_v6  ;;  %v2011_v47 = vadd.f32 %v2003_v10, %v4671_v0  ;;  %2677 = vmatpush.msrb.mxu1 %v2659_v7  ;;  %v2050_v20 = vld [vmem:[%s4637_s6 + $0x68] sm:$0xff]  ;;  %v2051_v25 = vld [vmem:[%s4637_s6 + $0x70] sm:$0xff]  ;;  %v2928_v21 = vld [vmem:[%s4638_s7 + $0x40] sm:$0xff] }
 0x4f0   : > { %v2001_v42 = vadd.f32 %v1993_v56, %v1753_v28  ;;  %v2012_v19 = vadd.f32 %v2004_v61, %v4670_v43  ;;  %v2024_v37 = vadd.f32 %v3038_v49, %v2013_v39  ;;  %v2021_v52 = vadd.f32 %v3038_v49, %v2010_v5  ;;  %v2043_v56 = vld [vmem:[%s4637_s6 + $0x30] sm:$0xff]  ;;  %v2929_v27 = vld [vmem:[%s4638_s7 + $0x48] sm:$0xff]  ;;  %v2052_v34 = vld [vmem:[%s4637_s6 + $0x78] sm:$0xff] }
 0x4f1   : > { %v2035_v58 = vmax.f32 %v2027_v48, 0.0  ;;  %v2034_v4 = vmax.f32 %v2026_v57, 0.0  ;;  %v2033_v40 = vmax.f32 %v2025_v45, 0.0  ;;  %v2022_v50 = vadd.f32 %v3038_v49, %v2011_v47  ;;  %2678 = vmatpush.msrb.mxu1 %v2658_v16  ;;  %v2930_v59 = vld [vmem:[%s4638_s7 + $0x50] sm:$0xff]  ;;  %v2942_v6 = vld [vmem:[%s4638_s7 + $0xa0] sm:$0xff]  ;;  %v2939_v2 = vld [vmem:[%s4638_s7 + $0x88] sm:$0xff] }
 0x4f2   : > { %v2009_v13 = vadd.f32 %v2001_v42, %v4661_v3  ;;  %v2023_v63 = vadd.f32 %v3038_v49, %v2012_v19  ;;  %v2032_v55 = vmax.f32 %v2024_v37, 0.0  ;;  %v2029_v15 = vmax.f32 %v2021_v52, 0.0  ;;  %v2046_v42 = vld [vmem:[%s4637_s6 + $0x48] sm:$0xff]  ;;  %v2934_v3 = vld [vmem:[%s4638_s7 + $0x70] sm:$0xff]  ;;  %v2656_v48 = vld [vmem:[%s4642_s11 + $0x60] sm:$0xff] }
 0x4f3   : > { %v2030_v32 = vmax.f32 %v2022_v50, 0.0  ;;  %2679 = vmatpush.msrb.mxu1 %v2657_v41  ;;  %2213 = vmatpush.msrb.mxu0 %v2934_v3  ;;  %v2944_v61 = vld [vmem:[%s4638_s7 + $0xb0] sm:$0xff]  ;;  %v2938_v39 = vld [vmem:[%s4638_s7 + $0x80] sm:$0xff]  ;;  %v2955_v43 = vld [vmem:[%s4638_s7 + $0xf8] sm:$0xff] }
 0x4f4   : > { %v2017_v28 = vadd.f32 %v2009_v13, %v1893_v44  ;;  %v2031_v1 = vmax.f32 %v2023_v63, 0.0  ;;  %v2673_v44 = vld [vmem:[%s4642_s11 + $0xe8] sm:$0xff]  ;;  %v2940_v10 = vld [vmem:[%s4638_s7 + $0x90] sm:$0xff]  ;;  %v2952_v37 = vld [vmem:[%s4638_s7 + $0xe0] sm:$0xff] }
 0x4f5   : > { %2699 = vmatpush.msrb.mxu2 %v2673_v44  ;;  %v2933_v13 = vld [vmem:[%s4638_s7 + $0x68] sm:$0xff]  ;;  %2680 = vmatpush.msrb.mxu1 %v2656_v48  ;;  %v2954_v0 = vld [vmem:[%s4638_s7 + $0xf0] sm:$0xff]  ;;  %v2965_v50 = vld [vmem:[%s4638_s7 + $0x138] sm:$0xff] }
 0x4f6   : > { %v2028_v62 = vadd.f32 %v3038_v49, %v2017_v28  ;;  %2214 = vmatpush.msrb.mxu0 %v2933_v13  ;;  %v2932_v49 = vld [vmem:[%s4638_s7 + $0x60] sm:$0xff]  ;;  %v2995_v28 = vld [vmem:[%s4638_s7 + $0x1f8] sm:$0xff]  ;;  %v2993_v45 = vld [vmem:[%s4638_s7 + $0x1e8] sm:$0xff] }
 0x4f7   : > { %2700 = vmatpush.msrb.mxu2 %v2672_v31  ;;  %v2953_v47 = vld [vmem:[%s4638_s7 + $0xe8] sm:$0xff]  ;;  %v2950_v5 = vld [vmem:[%s4638_s7 + $0xd0] sm:$0xff]  ;;  %v2655_v52 = vld [vmem:[%s4642_s11 + $0x58] sm:$0xff] }
 0x4f8   : > { %v2036_v54 = vmax.f32 %v2028_v62, 0.0  ;;  %2215 = vmatpush.msrb.mxu0 %v2932_v49  ;;  %v2941_v62 = vld [vmem:[%s4638_s7 + $0x98] sm:$0xff]  ;;  %v2949_v63 = vld [vmem:[%s4638_s7 + $0xc8] sm:$0xff]  ;;  %2681 = vmatpush.msrb.mxu1 %v2655_v52  ;;  %v2974_v11 = vld [vmem:[%s4638_s7 + $0x170] sm:$0xff] }
 0x4f9   : > { %v2959_v7 = vld [vmem:[%s4638_s7 + $0x108] sm:$0xff]  ;;  %v2970_v44 = vld [vmem:[%s4638_s7 + $0x150] sm:$0xff]  ;;  %v2968_v41 = vld [vmem:[%s4638_s7 + $0x140] sm:$0xff] }
 0x4fa   : > { %2118 = vmatpush.msra.mxu3 %v2036_v54  ;;  %2216 = vmatpush.msrb.mxu0 %v2931_v53  ;;  %v2994_v54 = vld [vmem:[%s4638_s7 + $0x1f0] sm:$0xff]  ;;  %v2983_v13 = vld [vmem:[%s4638_s7 + $0x1a8] sm:$0xff]  ;;  %v2982_v49 = vld [vmem:[%s4638_s7 + $0x1a0] sm:$0xff] }
 0x4fb   : > { %2682 = vmatpush.msrb.mxu1 %v2654_v33  ;;  %v2984_v3 = vld [vmem:[%s4638_s7 + $0x1b0] sm:$0xff]  ;;  %v2978_v31 = vld [vmem:[%s4638_s7 + $0x180] sm:$0xff]  ;;  %v2667_v52 = vld [vmem:[%s4642_s11 + $0xb8] sm:$0xff] }
 0x4fc   : > { %2119 = vmatpush.msra.mxu3 %v2035_v58  ;;  %2217 = vmatpush.msrb.mxu0 %v2930_v59  ;;  %v2671_v58 = vld [vmem:[%s4642_s11 + $0xd8] sm:$0xff]  ;;  %v2989_v59 = vld [vmem:[%s4638_s7 + $0x1c8] sm:$0xff] }
 0x4fd   : > { %2701 = vmatpush.msrb.mxu2 %v2671_v58  ;;  %v2565_v33 = vld [vmem:[%s4640_s9 + $0xa8] sm:$0xff] }
 0x4fe   : > { %2120 = vmatpush.msra.mxu3 %v2034_v4  ;;  %2218 = vmatpush.msrb.mxu0 %v2929_v27  ;;  %v2951_v4 = vld [vmem:[%s4638_s7 + $0xd8] sm:$0xff] }
 0x4ff   : > { %v2981_v27 = vld [vmem:[%s4638_s7 + $0x198] sm:$0xff] }
 0x500   : > { %2121 = vmatpush.msra.mxu3 %v2033_v40  ;;  %2219 = vmatpush.msrb.mxu0 %v2928_v21  ;;  %v2948_v40 = vld [vmem:[%s4638_s7 + $0xc0] sm:$0xff]  ;;  %v2980_v21 = vld [vmem:[%s4638_s7 + $0x190] sm:$0xff] }
 0x502   : > { %2122 = vmatpush.msra.mxu3 %v2032_v55  ;;  %2250 = vmatpush.msra.mxu0 %v2945_v36 }
 0x504   : > { %2123 = vmatpush.msra.mxu3 %v2031_v1  ;;  %2251 = vmatpush.msra.mxu0 %v2944_v61  ;;  %v2964_v1 = vld [vmem:[%s4638_s7 + $0x130] sm:$0xff]  ;;  %v2188_v61 = vld [vmem:[%s4638_s7 + $0x38] sm:$0xff] }
 0x506   : > { %2124 = vmatpush.msra.mxu3 %v2030_v32  ;;  %2252 = vmatpush.msra.mxu0 %v2943_v46  ;;  %v2963_v32 = vld [vmem:[%s4638_s7 + $0x128] sm:$0xff]  ;;  %v2187_v46 = vld [vmem:[%s4638_s7 + $0x30] sm:$0xff] }
 0x508   : > { %2125 = vmatpush.msra.mxu3 %v2029_v15  ;;  %2253 = vmatpush.msra.mxu0 %v2942_v6  ;;  %v2962_v15 = vld [vmem:[%s4638_s7 + $0x120] sm:$0xff]  ;;  %v2186_v6 = vld [vmem:[%s4638_s7 + $0x28] sm:$0xff] }
 0x509   : > { %2910 = vmatmul.msk.f32.vlgmr.msra.gmra.mxu3 %vm2055_vm3, %v2037_v38  ;;  %v2961_v38 = vld [vmem:[%s4638_s7 + $0x118] sm:$0xff] }
 0x50a   : > { %2440 = vmatpush.msrb.mxu3 %v2995_v28  ;;  %2254 = vmatpush.msra.mxu0 %v2941_v62  ;;  %v2979_v28 = vld [vmem:[%s4638_s7 + $0x188] sm:$0xff]  ;;  %v2185_v62 = vld [vmem:[%s4638_s7 + $0x20] sm:$0xff] }
 0x50c   : > { %2255 = vmatpush.msra.mxu0 %v2940_v10  ;;  %2441 = vmatpush.msrb.mxu3 %v2994_v54  ;;  %v2183_v10 = vld [vmem:[%s4638_s7 + $0x10] sm:$0xff]  ;;  %v2181_v54 = vld [vmem:[%s4638_s7] sm:$0xff] }
 0x50e   : > { %2256 = vmatpush.msra.mxu0 %v2939_v2  ;;  %2442 = vmatpush.msrb.mxu3 %v2993_v45  ;;  %v2669_v2 = vld [vmem:[%s4642_s11 + $0xc8] sm:$0xff]  ;;  %v3004_v45 = vld [vmem:[%s4638_s7 + $0x230] sm:$0xff] }
 0x510   : > { %2257 = vmatpush.msra.mxu0 %v2938_v39  ;;  %2443 = vmatpush.msrb.mxu3 %v2992_v8  ;;  %v2182_v39 = vld [vmem:[%s4638_s7 + $0x8] sm:$0xff] }
 0x511   : > { %2911 = vmatmul.msk.f32.gmra.mxu3 %vm2055_vm3, %v2038_v35 }
 0x519   : > { %2912 = vmatmul.msk.f32.gmra.mxu3 %vm2055_vm3, %v2039_v26  ;;  %v2960_v26 = vld [vmem:[%s4638_s7 + $0x110] sm:$0xff] }
 0x521   : > { %2913 = vmatmul.msk.f32.gmra.mxu3 %vm2055_vm3, %v2040_v30  ;;  %v2958_v30 = vld [vmem:[%s4638_s7 + $0x100] sm:$0xff] }
 0x529   : > { %2914 = vmatmul.msk.f32.gmra.mxu3 %vm2055_vm3, %v2041_v60  ;;  %v2975_v60 = vld [vmem:[%s4638_s7 + $0x178] sm:$0xff] }
 0x531   : > { %2915 = vmatmul.msk.f32.gmra.mxu3 %vm2055_vm3, %v2042_v14 }
 0x539   : > { %2916 = vmatmul.msk.f32.gmra.mxu3 %vm2055_vm3, %v2043_v56  ;;  %v2973_v56 = vld [vmem:[%s4638_s7 + $0x168] sm:$0xff] }
 0x541   : > { %2917 = vmatmul.msk.f32.gmra.mxu3 %vm2055_vm3, %v2044_v22  ;;  %v2972_v22 = vld [vmem:[%s4638_s7 + $0x160] sm:$0xff] }
 0x549   : > { %2918 = vmatmul.msk.f32.gmra.mxu3 %vm2055_vm3, %v2045_v9  ;;  %v2991_v9 = vld [vmem:[%s4638_s7 + $0x1d8] sm:$0xff] }
 0x54a   : > { %2444 = vmatpush.msrb.mxu3 %v2991_v9  ;;  %v2571_v9 = vld [vmem:[%s4640_s9 + $0xd8] sm:$0xff] }
 0x551   : > { %2919 = vmatmul.msk.f32.gmra.mxu3 %vm2055_vm3, %v2046_v42  ;;  %v2670_v42 = vld [vmem:[%s4642_s11 + $0xd0] sm:$0xff] }
 0x552   : > { %2702 = vmatpush.msrb.mxu2 %v2670_v42 }
 0x554   : > { %2703 = vmatpush.msrb.mxu2 %v2669_v2  ;;  %v2649_v2 = vld [vmem:[%s4642_s11 + $0x28] sm:$0xff] }
 0x559   : > { %2920 = vmatmul.msk.f32.gmra.mxu3 %vm2055_vm3, %v2047_v12  ;;  %v2971_v12 = vld [vmem:[%s4638_s7 + $0x158] sm:$0xff] }
 0x561   : > { %2921 = vmatmul.msk.f32.gmra.mxu3 %vm2055_vm3, %v2048_v17  ;;  %v2969_v17 = vld [vmem:[%s4638_s7 + $0x148] sm:$0xff] }
 0x569   : > { %2922 = vmatmul.msk.f32.gmra.mxu3 %vm2055_vm3, %v2049_v24 }
 0x571   : > { %2923 = vmatmul.msk.f32.gmra.mxu3 %vm2055_vm3, %v2050_v20  ;;  %v2985_v20 = vld [vmem:[%s4638_s7 + $0x1b8] sm:$0xff] }
 0x579   : > { %2924 = vmatmul.msk.f32.gmra.mxu3 %vm2055_vm3, %v2051_v25  ;;  %v2990_v25 = vld [vmem:[%s4638_s7 + $0x1d0] sm:$0xff] }
 0x57a   : > { %2445 = vmatpush.msrb.mxu3 %v2990_v25  ;;  %v2558_v25 = vld [vmem:[%s4640_s9 + $0x70] sm:$0xff] }
 0x57c   : > { %2446 = vmatpush.msrb.mxu3 %v2989_v59  ;;  %v2559_v59 = vld [vmem:[%s4640_s9 + $0x78] sm:$0xff] }
 0x581   : > { %2925 = vmatmul.msk.f32.gmra.mxu3 %vm2055_vm3, %v2052_v34  ;;  %v2988_v34 = vld [vmem:[%s4638_s7 + $0x1c0] sm:$0xff] }
 0x582   : > { %2447 = vmatpush.msrb.mxu3 %v2988_v34  ;;  %v2553_v34 = vld [vmem:[%s4640_s9 + $0x48] sm:$0xff] }
 0x584   : > { %2508 = vmatpush.msra.mxu3 %v2188_v61 }
 0x586   : > { %2509 = vmatpush.msra.mxu3 %v2187_v46  ;;  %v2665_v46 = vld [vmem:[%s4642_s11 + $0xa8] sm:$0xff] }
 0x588   : > { %2510 = vmatpush.msra.mxu3 %v2186_v6  ;;  %v2550_v6 = vld [vmem:[%s4640_s9 + $0x30] sm:$0xff] }
 0x589   : > { %2926 = vmatmul.msk.f32.gmra.mxu3 %vm2055_vm3, %v2053_v23  ;;  %v2184_v23 = vld [vmem:[%s4638_s7 + $0x18] sm:$0xff] }
 0x58a   : > { %2511 = vmatpush.msra.mxu3 %v2185_v62  ;;  %v2551_v62 = vld [vmem:[%s4640_s9 + $0x38] sm:$0xff] }
 0x58c   : > { %v4218_v57 = vpop.f32.mrf.mxu3  ;;  %2512 = vmatpush.msra.mxu3 %v2184_v23  ;;  %v2548_v23 = vld [vmem:[%s4640_s9 + $0x20] sm:$0xff] }
 0x58e   : > { %2513 = vmatpush.msra.mxu3 %v2183_v10  ;;  %v2549_v10 = vld [vmem:[%s4640_s9 + $0x28] sm:$0xff] }
 0x590   : > { %2514 = vmatpush.msra.mxu3 %v2182_v39  ;;  %v2546_v39 = vld [vmem:[%s4640_s9 + $0x10] sm:$0xff] }
 0x591   : > { %2927 = vmatmul.msk.f32.gmra.mxu3 %vm2055_vm3, %v2054_v18 }
 0x592   : > { %2515 = vmatpush.msra.mxu3 %v2181_v54  ;;  %v2547_v54 = vld [vmem:[%s4640_s9 + $0x18] sm:$0xff] }
 0x594   : > { %v4227_v29 = vpop.f32.mrf.mxu3 }
 0x59c   : > { %v2133_v19 = vpop.f32.mrf.mxu3 }
 0x59d   : > { %2936 = vmatmul.msk.f32.vlgmr.msrb.gmra.mxu0 %vm2055_vm3, %v2133_v19  ;;  %v2653_v19 = vld [vmem:[%s4642_s11 + $0x48] sm:$0xff] }
 0x59e   : > { %2288 = vmatpush.msrb.mxu0 %v2955_v43  ;;  %v3005_v43 = vld [vmem:[%s4638_s7 + $0x238] sm:$0xff]  ;;  %2683 = vmatpush.msrb.mxu1 %v2653_v19 }
 0x5a0   : > { %2289 = vmatpush.msrb.mxu0 %v2954_v0  ;;  %v3003_v0 = vld [vmem:[%s4638_s7 + $0x228] sm:$0xff] }
 0x5a2   : > { %2290 = vmatpush.msrb.mxu0 %v2953_v47  ;;  %v3002_v47 = vld [vmem:[%s4638_s7 + $0x220] sm:$0xff] }
 0x5a4   : > { %v2136_v51 = vpop.f32.mrf.mxu3  ;;  %2291 = vmatpush.msrb.mxu0 %v2952_v37  ;;  %v3001_v37 = vld [vmem:[%s4638_s7 + $0x218] sm:$0xff] }
 0x5a5   : > { %2937 = vmatmul.msk.f32.gmra.mxu0 %vm2055_vm3, %v2136_v51  ;;  %v2652_v51 = vld [vmem:[%s4642_s11 + $0x40] sm:$0xff] }
 0x5a6   : > { %2292 = vmatpush.msrb.mxu0 %v2951_v4  ;;  %v2668_v4 = vld [vmem:[%s4642_s11 + $0xc0] sm:$0xff]  ;;  %2684 = vmatpush.msrb.mxu1 %v2652_v51  ;;  %v2646_v51 = vld [vmem:[%s4642_s11 + $0x10] sm:$0xff] }
 0x5a7   : > { %2704 = vmatpush.msrb.mxu2 %v2668_v4  ;;  %v2662_v4 = vld [vmem:[%s4642_s11 + $0x90] sm:$0xff] }
 0x5a8   : > { %2293 = vmatpush.msrb.mxu0 %v2950_v5  ;;  %v3000_v5 = vld [vmem:[%s4638_s7 + $0x210] sm:$0xff] }
 0x5a9   : > { %2705 = vmatpush.msrb.mxu2 %v2667_v52 }
 0x5aa   : > { %2294 = vmatpush.msrb.mxu0 %v2949_v63  ;;  %v2999_v63 = vld [vmem:[%s4638_s7 + $0x208] sm:$0xff] }
 0x5ac   : > { %v2139_v55 = vpop.f32.mrf.mxu3  ;;  %2295 = vmatpush.msrb.mxu0 %v2948_v40 }
 0x5ad   : > { %2946 = vmatmul.msk.f32.vlgmr.msra.gmra.mxu0 %vm2055_vm3, %v2139_v55 }
 0x5ae   : > { %2326 = vmatpush.msra.mxu0 %v2965_v50  ;;  %v2998_v50 = vld [vmem:[%s4638_s7 + $0x200] sm:$0xff] }
 0x5b0   : > { %2327 = vmatpush.msra.mxu0 %v2964_v1 }
 0x5b2   : > { %2328 = vmatpush.msra.mxu0 %v2963_v32  ;;  %v2651_v32 = vld [vmem:[%s4642_s11 + $0x38] sm:$0xff] }
 0x5b3   : > { %2685 = vmatpush.msrb.mxu1 %v2651_v32 }
 0x5b4   : > { %v2142_v35 = vpop.f32.mrf.mxu3  ;;  %2329 = vmatpush.msra.mxu0 %v2962_v15 }
 0x5b5   : > { %2947 = vmatmul.msk.f32.gmra.mxu0 %vm2055_vm3, %v2142_v35 }
 0x5b6   : > { %2330 = vmatpush.msra.mxu0 %v2961_v38 }
 0x5b8   : > { %2331 = vmatpush.msra.mxu0 %v2960_v26  ;;  %v2650_v26 = vld [vmem:[%s4642_s11 + $0x30] sm:$0xff] }
 0x5b9   : > { %2686 = vmatpush.msrb.mxu1 %v2650_v26 }
 0x5ba   : > { %2332 = vmatpush.msra.mxu0 %v2959_v7 }
 0x5bb   : > { %2687 = vmatpush.msrb.mxu1 %v2649_v2 }
 0x5bc   : > { %v2145_v14 = vpop.f32.mrf.mxu3  ;;  %2333 = vmatpush.msra.mxu0 %v2958_v30 }
 0x5bd   : > { %2956 = vmatmul.msk.f32.vlgmr.msrb.gmra.mxu0 %vm2055_vm3, %v2145_v14  ;;  %v2574_v14 = vld [vmem:[%s4640_s9 + $0xf0] sm:$0xff] }
 0x5be   : > { %2364 = vmatpush.msrb.mxu0 %v2975_v60 }
 0x5c0   : > { %2365 = vmatpush.msrb.mxu0 %v2974_v11  ;;  %v2575_v11 = vld [vmem:[%s4640_s9 + $0xf8] sm:$0xff] }
 0x5c2   : > { %2366 = vmatpush.msrb.mxu0 %v2973_v56  ;;  %v2572_v56 = vld [vmem:[%s4640_s9 + $0xe0] sm:$0xff] }
 0x5c4   : > { %v2148_v16 = vpop.f32.mrf.mxu3  ;;  %2367 = vmatpush.msrb.mxu0 %v2972_v22  ;;  %v2573_v22 = vld [vmem:[%s4640_s9 + $0xe8] sm:$0xff] }
 0x5c5   : > { %2957 = vmatmul.msk.f32.gmra.mxu0 %vm2055_vm3, %v2148_v16  ;;  %v2570_v16 = vld [vmem:[%s4640_s9 + $0xd0] sm:$0xff] }
 0x5c6   : > { %2368 = vmatpush.msrb.mxu0 %v2971_v12  ;;  %v2568_v12 = vld [vmem:[%s4640_s9 + $0xc0] sm:$0xff] }
 0x5c8   : > { %2369 = vmatpush.msrb.mxu0 %v2970_v44  ;;  %v2569_v44 = vld [vmem:[%s4640_s9 + $0xc8] sm:$0xff] }
 0x5ca   : > { %2370 = vmatpush.msrb.mxu0 %v2969_v17  ;;  %v2566_v17 = vld [vmem:[%s4640_s9 + $0xb0] sm:$0xff] }
 0x5cc   : > { %v2151_v24 = vpop.f32.mrf.mxu3  ;;  %2371 = vmatpush.msrb.mxu0 %v2968_v41  ;;  %v2567_v41 = vld [vmem:[%s4640_s9 + $0xb8] sm:$0xff] }
 0x5cd   : > { %2966 = vmatmul.msk.f32.vlgmr.msra.gmra.mxu0 %vm2055_vm3, %v2151_v24  ;;  %v2564_v24 = vld [vmem:[%s4640_s9 + $0xa0] sm:$0xff] }
 0x5ce   : > { %2402 = vmatpush.msra.mxu0 %v2985_v20  ;;  %v2562_v20 = vld [vmem:[%s4640_s9 + $0x90] sm:$0xff] }
 0x5d0   : > { %2403 = vmatpush.msra.mxu0 %v2984_v3  ;;  %v2563_v3 = vld [vmem:[%s4640_s9 + $0x98] sm:$0xff] }
 0x5d2   : > { %2404 = vmatpush.msra.mxu0 %v2983_v13 }
 0x5d4   : > { %v2154_v53 = vpop.f32.mrf.mxu3  ;;  %2405 = vmatpush.msra.mxu0 %v2982_v49  ;;  %v2560_v49 = vld [vmem:[%s4640_s9 + $0x80] sm:$0xff] }
 0x5d5   : > { %2967 = vmatmul.msk.f32.gmra.mxu0 %vm2055_vm3, %v2154_v53  ;;  %v2561_v53 = vld [vmem:[%s4640_s9 + $0x88] sm:$0xff] }
 0x5d6   : > { %2406 = vmatpush.msra.mxu0 %v2981_v27  ;;  %v2556_v27 = vld [vmem:[%s4640_s9 + $0x60] sm:$0xff] }
 0x5d8   : > { %2407 = vmatpush.msra.mxu0 %v2980_v21  ;;  %v2557_v21 = vld [vmem:[%s4640_s9 + $0x68] sm:$0xff] }
 0x5da   : > { %2408 = vmatpush.msra.mxu0 %v2979_v28  ;;  %v2554_v28 = vld [vmem:[%s4640_s9 + $0x50] sm:$0xff] }
 0x5dc   : > { %v2157_v36 = vpop.f32.mrf.mxu3  ;;  %2409 = vmatpush.msra.mxu0 %v2978_v31  ;;  %v2555_v31 = vld [vmem:[%s4640_s9 + $0x58] sm:$0xff] }
 0x5dd   : > { %2976 = vmatmul.msk.f32.vlgmr.msrb.gmra.mxu0 %vm2055_vm3, %v2157_v36  ;;  %v2552_v36 = vld [vmem:[%s4640_s9 + $0x40] sm:$0xff] }
 0x5de   : > { %2478 = vmatpush.msrb.mxu0 %v3005_v43  ;;  %v2545_v43 = vld [vmem:[%s4640_s9 + $0x8] sm:$0xff] }
 0x5e0   : > { %2479 = vmatpush.msrb.mxu0 %v3004_v45 }
 0x5e2   : > { %2480 = vmatpush.msrb.mxu0 %v3003_v0  ;;  %v2648_v0 = vld [vmem:[%s4642_s11 + $0x20] sm:$0xff] }
 0x5e3   : > { %2688 = vmatpush.msrb.mxu1 %v2648_v0 }
 0x5e4   : > { %v2160_v48 = vpop.f32.mrf.mxu3  ;;  %2481 = vmatpush.msrb.mxu0 %v3002_v47  ;;  %v2663_v47 = vld [vmem:[%s4642_s11 + $0x98] sm:$0xff] }
 0x5e5   : > { %2977 = vmatmul.msk.f32.gmra.mxu0 %vm2055_vm3, %v2160_v48 }
 0x5e6   : > { %2482 = vmatpush.msrb.mxu0 %v3001_v37  ;;  %v2647_v37 = vld [vmem:[%s4642_s11 + $0x18] sm:$0xff] }
 0x5e7   : > { %2689 = vmatpush.msrb.mxu1 %v2647_v37 }
 0x5e8   : > { %2483 = vmatpush.msrb.mxu0 %v3000_v5 }
 0x5e9   : > { %2690 = vmatpush.msrb.mxu1 %v2646_v51 }
 0x5ea   : > { %2484 = vmatpush.msrb.mxu0 %v2999_v63 }
 0x5ec   : > { %v2163_v18 = vpop.f32.mrf.mxu3  ;;  %2485 = vmatpush.msrb.mxu0 %v2998_v50 }
 0x5ed   : > { %2986 = vmatmul.msk.f32.vlgmr.msra.gmra.mxu0 %vm2055_vm3, %v2163_v18  ;;  %v2544_v18 = vld [vmem:[%s4640_s9] sm:$0xff] }
 0x5ee   : > { %2576 = vmatpush.msra.mxu0 %v2574_v14 }
 0x5f0   : > { %2577 = vmatpush.msra.mxu0 %v2572_v56 }
 0x5f2   : > { %2578 = vmatpush.msra.mxu0 %v2570_v16 }
 0x5f4   : > { %v2166_v58 = vpop.f32.mrf.mxu3  ;;  %2579 = vmatpush.msra.mxu0 %v2568_v12 }
 0x5f5   : > { %2987 = vmatmul.msk.f32.gmra.mxu0 %vm2055_vm3, %v2166_v58  ;;  %v2664_v58 = vld [vmem:[%s4642_s11 + $0xa0] sm:$0xff] }
 0x5f6   : > { %2580 = vmatpush.msra.mxu0 %v2566_v17 }
 0x5f8   : > { %2581 = vmatpush.msra.mxu0 %v2564_v24  ;;  %v2660_v24 = vld [vmem:[%s4642_s11 + $0x80] sm:$0xff] }
 0x5fa   : > { %2582 = vmatpush.msra.mxu0 %v2562_v20  ;;  %v2622_v20 = vld [vmem:[%s4641_s10] sm:$0xff] }
 0x5fc   : > { %v2169_v40 = vpop.f32.mrf.mxu3  ;;  %2583 = vmatpush.msra.mxu0 %v2560_v49 }
 0x5fd   : > { %2996 = vmatmul.msk.f32.vlgmr.msrb.gmra.mxu3 %vm2055_vm3, %v2169_v40 }
 0x5fe   : > { %2599 = vmatpush.msrb.mxu3 %v2575_v11  ;;  %2584 = vmatpush.msra.mxu0 %v2558_v25 }
 0x600   : > { %2600 = vmatpush.msrb.mxu3 %v2573_v22  ;;  %2585 = vmatpush.msra.mxu0 %v2556_v27  ;;  %v2623_v27 = vld [vmem:[%s4641_s10 + $0x8] sm:$0xff] }
 0x602   : > { %2601 = vmatpush.msrb.mxu3 %v2571_v9  ;;  %2586 = vmatpush.msra.mxu0 %v2554_v28 }
 0x604   : > { %v2172_v55 = vpop.f32.mrf.mxu3  ;;  %2602 = vmatpush.msrb.mxu3 %v2569_v44  ;;  %2587 = vmatpush.msra.mxu0 %v2552_v36 }
 0x605   : > { %2997 = vmatmul.msk.f32.gmra.mxu3 %vm2055_vm3, %v2172_v55 }
 0x606   : > { %2603 = vmatpush.msrb.mxu3 %v2567_v41  ;;  %2588 = vmatpush.msra.mxu0 %v2550_v6  ;;  %v2644_v41 = vld [vmem:[%s4642_s11] sm:$0xff] }
 0x608   : > { %2604 = vmatpush.msrb.mxu3 %v2565_v33  ;;  %2589 = vmatpush.msra.mxu0 %v2548_v23 }
 0x60a   : > { %2605 = vmatpush.msrb.mxu3 %v2563_v3  ;;  %2590 = vmatpush.msra.mxu0 %v2546_v39 }
 0x60c   : > { %v2175_v1 = vpop.f32.mrf.mxu3  ;;  %2606 = vmatpush.msrb.mxu3 %v2561_v53  ;;  %2591 = vmatpush.msra.mxu0 %v2544_v18 }
 0x60d   : > { %3008 = vmatmul.msk.f32.vlgmr.msra.gmra.mxu3 %vm2055_vm3, %v4218_v57  ;;  %3006 = vmatmul.msk.f32.vlgmr.msrb.gmra.mxu0 %vm2055_vm3, %v2175_v1  ;;  %v2666_v57 = vld [vmem:[%s4642_s11 + $0xb0] sm:$0xff] }
 0x60e   : > { %2706 = vmatpush.msrb.mxu2 %v2666_v57  ;;  %2607 = vmatpush.msrb.mxu3 %v2559_v59 }
 0x610   : > { %2608 = vmatpush.msrb.mxu3 %v2557_v21  ;;  %2707 = vmatpush.msrb.mxu2 %v2665_v46  ;;  %v2625_v21 = vld [vmem:[%s4641_s10 + $0x18] sm:$0xff] }
 0x612   : > { %2609 = vmatpush.msrb.mxu3 %v2555_v31  ;;  %2708 = vmatpush.msrb.mxu2 %v2664_v58 }
 0x614   : > { %v2178_v15 = vpop.f32.mrf.mxu3  ;;  %2610 = vmatpush.msrb.mxu3 %v2553_v34  ;;  %2709 = vmatpush.msrb.mxu2 %v2663_v47 }
 0x615   : > { %3009 = vmatmul.msk.f32.gmra.mxu3 %vm2055_vm3, %v4227_v29  ;;  %3007 = vmatmul.msk.f32.gmra.mxu0 %vm2055_vm3, %v2178_v15 }
 0x616   : > { %2611 = vmatpush.msrb.mxu3 %v2551_v62  ;;  %2710 = vmatpush.msrb.mxu2 %v2662_v4 }
 0x618   : > { %2612 = vmatpush.msrb.mxu3 %v2549_v10 }
 0x61a   : > { %v4441_v38 = vpop.f32.mrf.mxu0  ;;  %2613 = vmatpush.msrb.mxu3 %v2547_v54 }
 0x61c   : > { %2614 = vmatpush.msrb.mxu3 %v2545_v43 }
 0x622   : > { %v4443_v35 = vpop.f32.mrf.mxu0 }
 0x62a   : > { %v4448_v8 = vpop.f32.mrf.mxu0 }
 0x632   : > { %v4453_v7 = vpop.f32.mrf.mxu0 }
 0x63a   : > { %v4455_v29 = vpop.f32.mrf.mxu0 }
 0x642   : > { %v4457_v30 = vpop.f32.mrf.mxu0 }
 0x64a   : > { %v4459_v60 = vpop.f32.mrf.mxu0 }
 0x652   : > { %v4479_v42 = vpop.f32.mrf.mxu0 }
 0x65a   : > { %v4505_v13 = vpop.f32.mrf.mxu0 }
 0x662   : > { %v2376_v61 = vpop.f32.mrf.mxu0 }
 0x66a   : > { %v2411_v45 = vpop.f32.mrf.mxu0 }
 0x672   : > { %v2414_v40 = vpop.f32.mrf.mxu0 }
 0x680   : > { %v2449_v48 = vpop.f32.mrf.mxu3 }
 0x688   : > { %v2452_v19 = vpop.f32.mrf.mxu3 }
 0x68a   : > { %v2487_v57 = vpop.f32.mrf.mxu0 }
 0x690   : > { %v2517_v5 = vpop.f32.mrf.mxu3 }
 0x691   : > { %v2518_v63 = vadd.f32 %v2517_v5, %v4441_v38 }
 0x692   : > { %v2490_v9 = vpop.f32.mrf.mxu0 }
 0x693   : > { %v2523_v50 = vadd.f32 %v2518_v63, %v4448_v8  ;;  %v3039_v8 = vld [vmem:[%s4639_s8] ss:$0 sm:$0xff] }
 0x695   : > { %v2525_v55 = vadd.f32 %v2523_v50, %v4455_v29 }
 0x697   : > { %v2527_v52 = vadd.f32 %v2525_v55, %v4459_v60 }
 0x698   : > { %v2520_v1 = vpop.f32.mrf.mxu3 }
 0x699   : > { %v2521_v32 = vadd.f32 %v2520_v1, %v4443_v35  ;;  %v2529_v15 = vadd.f32 %v2527_v52, %v4505_v13  ;;  %v2624_v13 = vld [vmem:[%s4641_s10 + $0x10] sm:$0xff] }
 0x69b   : > { %v2524_v26 = vadd.f32 %v2521_v32, %v4453_v7  ;;  %v2531_v14 = vadd.f32 %v2529_v15, %v2411_v45 }
 0x69d   : > { %v2526_v38 = vadd.f32 %v2524_v26, %v4457_v30  ;;  %v2533_v11 = vadd.f32 %v2531_v14, %v2449_v48  ;;  %v2661_v30 = vld [vmem:[%s4642_s11 + $0x88] sm:$0xff] }
 0x69e   : > { %2711 = vmatpush.msrb.mxu2 %v2661_v30 }
 0x69f   : > { %v2528_v29 = vadd.f32 %v2526_v38, %v4479_v42  ;;  %v2535_v56 = vadd.f32 %v2533_v11, %v2487_v57  ;;  %v2645_v42 = vld [vmem:[%s4642_s11 + $0x8] sm:$0xff] }
 0x6a0   : > { %2691 = vmatpush.msrb.mxu1 %v2645_v42  ;;  %2712 = vmatpush.msrb.mxu2 %v2660_v24 }
 0x6a1   : > { %v2540_v60 = vadd.f32 %v3039_v8, %v2535_v56  ;;  %v2530_v22 = vadd.f32 %v2528_v29, %v2376_v61 }
 0x6a2   : > { %2692 = vmatpush.msrb.mxu1 %v2644_v41 }
 0x6a3   : > { %v2542_v16 = vmax.f32 %v2540_v60, 0.0  ;;  %v2532_v35 = vadd.f32 %v2530_v22, %v2414_v40 }
 0x6a5   : > { %2592 = vmatmul.f32.vlgmr.msra.gmra.mxu0 %v2542_v16  ;;  %2615 = vmatmul.f32.vlgmr.msrb.gmra.mxu3 %v2542_v16  ;;  %v2534_v12 = vadd.f32 %v2532_v35, %v2452_v19  ;;  %v2676_v19 = vld [vmem:[%s4643_s12] sm:$0x1] }
 0x6a7   : > { %v2536_v7 = vadd.f32 %v2534_v12, %v2490_v9 }
 0x6a9   : > { %v2541_v44 = vadd.f32 %v3039_v8, %v2536_v7 }
 0x6ab   : > { %v2543_v17 = vmax.f32 %v2541_v44, 0.0 }
 0x6ad   : > { %2595 = vmatmul.f32.gmra.mxu0 %v2543_v17  ;;  %2618 = vmatmul.f32.gmra.mxu3 %v2543_v17 }
 0x722   : > { %v2593_v33 = vpop.f32.mrf.mxu0 }
 0x723   : > { %v2626_v53 = vmul.f32 %v2622_v20, %v2593_v33 }
 0x728   : > { %v2616_v3 = vpop.f32.mrf.mxu3 }
 0x729   : > { %v2627_v36 = vmul.f32 %v2623_v27, %v2616_v3 }
 0x72a   : > { %v2596_v49 = vpop.f32.mrf.mxu0 }
 0x72b   : > { %v2628_v25 = vmul.f32 %v2624_v13, %v2596_v49 }
 0x72d   : > { %v2630_v59 = vadd.f32 %v2628_v25, %v2626_v53 }
 0x72f   : > { %v2631_v28 = vrot.slane %v2630_v59, 4 }
 0x730   : > { %v2619_v31 = vpop.f32.mrf.mxu3 }
 0x731   : > { %v2632_v34 = vadd.f32 %v2631_v28, %v2630_v59  ;;  %v2629_v61 = vmul.f32 %v2625_v21, %v2619_v31 }
 0x733   : > { %v2633_v46 = vrot.slane %v2632_v34, 2  ;;  %v2637_v6 = vadd.f32 %v2629_v61, %v2627_v36 }
 0x735   : > { %v2634_v48 = vadd.f32 %v2633_v46, %v2632_v34  ;;  %v2638_v62 = vrot.slane %v2637_v6, 4 }
 0x737   : > { %v2635_v23 = vrot.slane %v2634_v48, 1  ;;  %v2639_v10 = vadd.f32 %v2638_v62, %v2637_v6 }
 0x739   : > { %v2640_v2 = vrot.slane %v2639_v10, 2  ;;  %v2636_v39 = vadd.f32 %v2635_v23, %v2634_v48 }
 0x73b   : > { %v2641_v54 = vadd.f32 %v2640_v2, %v2639_v10  ;;  %2693 = vmatmul.f32.vlgmr.msrb.gmra.mxu1 %v2636_v39 }
 0x73d   : > { %v2642_v18 = vrot.slane %v2641_v54, 1 }
 0x73f   : > { %v2643_v43 = vadd.f32 %v2642_v18, %v2641_v54 }
 0x741   : > { %2713 = vmatmul.f32.vlgmr.msrb.gmra.mxu2 %v2643_v43 }
 0x7b8   : > { %v2694_v45 = vpop.f32.mrf.mxu1 }
 0x7b9   : > { %v2695_v58 = vadd.f32 %v2694_v45, %v2676_v19 }
 0x7c4   : > { %v2714_v0 = vpop.f32.mrf.mxu2 }
 0x7c5   : > { %v2715_v47 = vadd.f32 %v2714_v0, %v2695_v58 }
 0x7c7   : > { %2718 = vst.msk [vmem:[%s436_s14] sm:$0x1] %vm2717_vm4, %v2715_v47 }
 0x7c8 PF: > { %s23_s25 = sadd.s32 1, %s3046_s25  }
 0x7c9   : > { %p20_p4 = scmp.ge.s32.totalorder %s23_s25, 4  }
 0x7cb   :  { %22 = sbr.rel (!%p20_p4) target bundleno = 1 (0x1), region = 118 }

</bundles_post_ra>
